<compile_context>
chip_gen: v7x
topology: tpu7x:2x2x1
jax: 0.10.0
libtpu: 0.0.40
codegen_flags: <defaults>
</compile_context>

<pallas_src>
import functools

import jax
import jax.numpy as jnp
import numpy as np
from jax.experimental import pallas as pl
from jax.experimental.pallas import tpu as pltpu


def _layernorm(x, gamma, beta, eps):
    mu = jnp.mean(x, axis=-1, keepdims=True)
    var = jnp.mean(jnp.square(x - mu), axis=-1, keepdims=True)
    return (x - mu) * jax.lax.rsqrt(var + eps) * gamma + beta


def _encoder_layer_kernel(x_hbm_ref, wa_ref, w2_ref, vec_ref,
                          y_ref, x_sc, attn_sc, copy_sem,
                          *, n_heads, eps, s_real):
    """One grid step == one TransformerEncoderLayer (post-norm, ReLU, dropout=0)."""
    l = pl.program_id(0)

    B, S, D = x_sc.shape                       # S is the padded sequence length
    H = n_heads
    Dh = D // H
    F = w2_ref.shape[1]
    R = B * S

    # One-shot DMA of the (already embedded + concatenated + padded) sequence into the
    # resident working scratch at layer 0; the HBM input is never kept resident in VMEM.
    @pl.when(l == 0)
    def _():
        cp = pltpu.make_async_copy(x_hbm_ref, x_sc, copy_sem)
        cp.start()
        cp.wait()

    # --- unpack this layer's parameter slabs (3 DMAs/layer, static-offset slices) ------
    Wa = wa_ref[0]                             # (D, 3D + D + F)  ==  [Wqkv | Wo | W1]
    vec = vec_ref[0]                           # (8, max(3D, F))  sublane-packed vectors
    bqkv = vec[0, :3 * D]                      # Q part already pre-scaled by 1/sqrt(Dh)
    bo = vec[1, :D]
    g1 = vec[2, :D]
    be1 = vec[3, :D]
    b1 = vec[4, :F]
    b2 = vec[5, :D]
    g2 = vec[6, :D]
    be2 = vec[7, :D]

    x2 = x_sc[...].reshape(R, D)               # flattened (B*S, D) f32 row slab

    # ---- self-attention: fused QKV projection (one MXU push over B*S rows) ------------
    # 1/sqrt(Dh) is folded into the Q columns of Wqkv/bqkv at pack time -> no `* scale`.
    qkv = jnp.dot(x2, Wa[:, :3 * D], preferred_element_type=jnp.float32) + bqkv

    # Head-major rearrangement: (H*B, S, Dh) so scores / AV are ONE batched matmul each.
    def head_slab(base):
        return jnp.stack(
            [qkv[:, base + h * Dh: base + (h + 1) * Dh].reshape(B, S, Dh)
             for h in range(H)], axis=0).reshape(H * B, S, Dh)

    qh = head_slab(0)
    kh = head_slab(D)
    vh = head_slab(2 * D)

    s = jnp.einsum('bqd,bkd->bqk', qh, kh, preferred_element_type=jnp.float32)
    if s_real < S:                             # static: only mask when padding exists
        key_ok = jax.lax.broadcasted_iota(jnp.int32, (1, 1, S), 2) < s_real
        s = jnp.where(key_ok, s, -1e30)
    s = s - jnp.max(s, axis=-1, keepdims=True)
    p = jnp.exp(s)
    denom = jnp.sum(p, axis=-1, keepdims=True)                       # (H*B, S, 1)
    o = jnp.einsum('bqk,bkd->bqd', p, vh, preferred_element_type=jnp.float32)
    o = o * pl.reciprocal(denom)               # deferred softmax normalization (exact)

    # No jnp.concatenate over heads: write each head's output to static lane offsets of
    # a VMEM scratch slab, then do one (B*S, D) @ (D, D) output projection.
    o4 = o.reshape(H, B, S, Dh)
    for h in range(H):
        attn_sc[:, h * Dh:(h + 1) * Dh] = o4[h].reshape(R, Dh)

    proj = jnp.dot(attn_sc[...], Wa[:, 3 * D:4 * D],
                   preferred_element_type=jnp.float32) + bo

    # residual + LayerNorm1 (post-norm, the nn.TransformerEncoderLayer default)
    h1 = _layernorm(x2 + proj, g1, be1, eps)

    # ---- feed-forward: Linear -> ReLU -> Linear ----------------------------------------
    f = jnp.dot(h1, Wa[:, 4 * D:], preferred_element_type=jnp.float32) + b1
    f = jnp.maximum(f, 0.0)
    f = jnp.dot(f, w2_ref[0], preferred_element_type=jnp.float32) + b2

    h2 = _layernorm(h1 + f, g2, be2, eps)
    x_sc[...] = h2.reshape(B, S, D)

    # After the last layer, emit only the last *real* token: pred_encoder(x)[:, -1:].
    # The output block has a constant index_map, so Pallas writes it back to HBM only
    # once (at grid end); earlier iterations never touch y_ref.
    @pl.when(l == pl.num_programs(0) - 1)
    def _():
        y_ref[...] = h2.reshape(B, S, D)[:, s_real - 1:s_real, :].astype(y_ref.dtype)


def _pack_layer_params(p, n_heads):
    """Pack the 14 per-layer arrays into 3 DMA slabs; fold 1/sqrt(Dh) into Q columns."""
    L, D, _ = p["Wqkv"].shape
    F = p["W1"].shape[2]
    Dh = D // n_heads
    scale = 1.0 / float(np.sqrt(Dh))

    wqkv = jnp.concatenate([p["Wqkv"][:, :, :D] * scale, p["Wqkv"][:, :, D:]], axis=-1)
    bqkv = jnp.concatenate([p["bqkv"][:, :, :D] * scale, p["bqkv"][:, :, D:]], axis=-1)

    w_a = jnp.concatenate([wqkv, p["Wo"], p["W1"]], axis=-1)      # (L, D, 3D + D + F)
    w2 = p["W2"]                                                  # (L, F, D)

    c = max(3 * D, F)

    def row(v):
        return jnp.pad(v, ((0, 0), (0, 0), (0, c - v.shape[2])))

    vecs = jnp.concatenate([
        row(bqkv), row(p["bo"]), row(p["g1"]), row(p["be1"]),
        row(p["b1"]), row(p["b2"]), row(p["g2"]), row(p["be2"]),
    ], axis=1)                                                    # (L, 8, max(3D, F))
    return w_a, w2, vecs


def raven_transformer_prediction(z, x_q, p, *, n_heads, eps=1e-5):
    """Wrapper: hoists context_embedding + concat into JAX, runs one fused Pallas kernel."""
    # context_embedding (nn.Linear(z_dim, dim)) — tiny, done once in plain XLA.
    if p.get("Wc") is not None:
        zc = z @ p["Wc"] + p["bc"]
    else:
        zc = z
    x = jnp.concatenate([zc[:, None, :], x_q], axis=1).astype(jnp.float32)   # (B, S, D)
    B, S, D = x.shape

    # Pad the sequence to a multiple of 8 so the flattened (B*S, D) slab tiles cleanly
    # on the f32 (8,128) vreg layout; padded keys are masked in-kernel.
    S_pad = (S + 7) // 8 * 8
    if S_pad != S:
        x = jnp.pad(x, ((0, 0), (0, S_pad - S), (0, 0)))

    w_a, w2, vecs = _pack_layer_params(p, n_heads)
    L = w_a.shape[0]
    F = w2.shape[1]

    kernel = functools.partial(_encoder_layer_kernel,
                               n_heads=n_heads, eps=eps, s_real=S)

    return pl.pallas_call(
        kernel,
        out_shape=jax.ShapeDtypeStruct((B, 1, D), jnp.float32),
        grid_spec=pltpu.PrefetchScalarGridSpec(
            num_scalar_prefetch=0,
            grid=(L,),
            in_specs=[
                # raw HBM ref; copied once into the resident VMEM scratch at layer 0
                pl.BlockSpec(memory_space=pl.ANY),
                # per-layer weight / vector slabs, streamed (auto double-buffered)
                pl.BlockSpec((1, D, w_a.shape[2]), lambda l: (l, 0, 0)),
                pl.BlockSpec((1, F, D), lambda l: (l, 0, 0)),
                pl.BlockSpec((1, vecs.shape[1], vecs.shape[2]), lambda l: (l, 0, 0)),
            ],
            out_specs=pl.BlockSpec((B, 1, D), lambda l: (0, 0, 0)),
            scratch_shapes=[
                pltpu.VMEM((B, S_pad, D), jnp.float32),       # resident activations
                pltpu.VMEM((B * S_pad, D), jnp.float32),      # per-layer attention slab
                pltpu.SemaphoreType.DMA,                      # one-shot input copy
            ],
        ),
        compiler_params=pltpu.CompilerParams(
            # layer axis carries a sequential dependency through the VMEM scratch
            dimension_semantics=("arbitrary",),
            # tiny at these shapes; re-derive at scale (x_sc + attn_sc + 2x layer slabs),
            # especially for v7x's 64 MiB/TC VMEM.
            vmem_limit_bytes=32 * 1024 * 1024,
        ),
    )(x, w_a, w2, vecs)


def init_params(key, dim, n_heads, n_hidden, n_layers, z_dim):
    """Weights in math orientation (in_features, out_features); QKV fused column-wise."""
    keys = jax.random.split(key, 16)

    def xavier(k, shape):
        fan_in, fan_out = shape[-2], shape[-1]
        lim = float(np.sqrt(6.0 / (fan_in + fan_out)))
        return jax.random.uniform(k, shape, jnp.float32, -lim, lim)

    def small(k, shape):
        return 0.02 * jax.random.normal(k, shape, dtype=jnp.float32)

    L, D, F = n_layers, dim, n_hidden
    p = {}
    if z_dim != dim:                      # self.context_embedding = nn.Linear(z_dim, dim)
        p["Wc"] = xavier(keys[0], (z_dim, D))
        p["bc"] = small(keys[1], (D,))
    else:                                 # self.context_embedding = None
        p["Wc"] = None
        p["bc"] = None
    p["Wqkv"] = xavier(keys[2], (L, D, 3 * D))      # fused in_proj (Q|K|V)
    p["bqkv"] = small(keys[3], (L, 1, 3 * D))
    p["Wo"] = xavier(keys[4], (L, D, D))            # out_proj
    p["bo"] = small(keys[5], (L, 1, D))
    p["g1"] = 1.0 + small(keys[6], (L, 1, D))       # LayerNorm1
    p["be1"] = small(keys[7], (L, 1, D))
    p["W1"] = xavier(keys[8], (L, D, F))            # FFN linear1
    p["b1"] = small(keys[9], (L, 1, F))
    p["W2"] = xavier(keys[10], (L, F, D))           # FFN linear2
    p["b2"] = small(keys[11], (L, 1, D))
    p["g2"] = 1.0 + small(keys[12], (L, 1, D))      # LayerNorm2
    p["be2"] = small(keys[13], (L, 1, D))
    return p


def reference(z, x_q, p, *, n_heads, eps=1e-5):
    """Plain-JAX mirror of the PyTorch forward (post-norm encoder, ReLU FFN, dropout=0)."""
    if p.get("Wc") is not None:
        zc = z @ p["Wc"] + p["bc"]
    else:
        zc = z
    x = jnp.concatenate([zc[:, None, :], x_q], axis=1)
    B, S, D = x.shape
    H, Dh = n_heads, D // n_heads
    L = p["Wqkv"].shape[0]
    for l in range(L):
        qkv = x @ p["Wqkv"][l] + p["bqkv"][l]
        q, k, v = jnp.split(qkv, 3, axis=-1)
        q = q.reshape(B, S, H, Dh).transpose(0, 2, 1, 3)
        k = k.reshape(B, S, H, Dh).transpose(0, 2, 1, 3)
        v = v.reshape(B, S, H, Dh).transpose(0, 2, 1, 3)
        s = (q @ jnp.swapaxes(k, -1, -2)) / np.sqrt(Dh)
        a = jax.nn.softmax(s, axis=-1)
        o = (a @ v).transpose(0, 2, 1, 3).reshape(B, S, D)
        o = o @ p["Wo"][l] + p["bo"][l]
        h = _layernorm(x + o, p["g1"][l], p["be1"][l], eps)
        f = jnp.maximum(h @ p["W1"][l] + p["b1"][l], 0.0) @ p["W2"][l] + p["b2"][l]
        x = _layernorm(h + f, p["g2"][l], p["be2"][l], eps)
    return x[:, -1:, :]


if __name__ == "__main__":
    jax.config.update("jax_default_matmul_precision", "highest")

    # Small shapes consistent with the module's forward:
    # batch=2, dim=32, n_heads=4, n_hidden=64, n_layers=2, z_dim=16 (-> context_embedding),
    # 7 query tokens -> sequence length 8 after prepending z.
    B, N_q = 2, 7
    dim, n_heads, n_hidden, n_layers, z_dim = 32, 4, 64, 2, 16

    key = jax.random.PRNGKey(0)
    kz, kx, kp = jax.random.split(key, 3)
    z = jax.random.normal(kz, (B, z_dim), dtype=jnp.float32)
    x_q = jax.random.normal(kx, (B, N_q, dim), dtype=jnp.float32)
    params = init_params(kp, dim, n_heads, n_hidden, n_layers, z_dim)

    y = raven_transformer_prediction(z, x_q, params, n_heads=n_heads)
    y = jax.block_until_ready(y)

    y_ref = reference(z, x_q, params, n_heads=n_heads)
    np.testing.assert_allclose(np.asarray(y), np.asarray(y_ref), rtol=1e-3, atol=1e-3)
    assert y.shape == (B, 1, dim) and y.dtype == jnp.float32

    print("KERNEL_OK")
</pallas_src>

<mosaic_0001>
module attributes {stable_mosaic.version = 11 : i64} {
  func.func @_encoder_layer_kernel(%arg0: i32, %arg1: memref<2x8x32xf32, #tpu.memory_space<any>>, %arg2: memref<1x32x192xf32, #tpu.memory_space<vmem>>, %arg3: memref<1x64x32xf32, #tpu.memory_space<vmem>>, %arg4: memref<1x8x96xf32, #tpu.memory_space<vmem>>, %arg5: memref<2x1x32xf32, #tpu.memory_space<vmem>>, %arg6: memref<2x8x32xf32, #tpu.memory_space<vmem>>, %arg7: memref<16x32xf32, #tpu.memory_space<vmem>>, %arg8: memref<!tpu.dma_semaphore, #tpu.memory_space<semaphore_mem>>) attributes {dimension_semantics = [#tpu.dimension_semantics<arbitrary>], iteration_bounds = array<i64: 2>, scalar_prefetch = 0 : i64, scratch_operands = 3 : i64, tpu.core_type = #tpu.core_type<tc>, window_params = [{}, {transform_indices = @transform_1, window_bounds = array<i64: 1, 32, 192>}, {transform_indices = @transform_2, window_bounds = array<i64: 1, 64, 32>}, {transform_indices = @transform_3, window_bounds = array<i64: 1, 8, 96>}, {pipeline_mode = #tpu.pipeline_mode<synchronous>, transform_indices = @transform_4, window_bounds = array<i64: 2, 1, 32>}]} {
    %c0_i32 = arith.constant 0 : i32
    %0 = arith.cmpi eq, %arg0, %c0_i32 : i32
    %1 = arith.extui %0 : i1 to i32
    %c0_i32_0 = arith.constant 0 : i32
    %2 = arith.cmpi ne, %1, %c0_i32_0 : i32
    scf.if %2 {
      tpu.enqueue_dma source(%arg1 : memref<2x8x32xf32, #tpu.memory_space<any>>) target(%arg6 : memref<2x8x32xf32, #tpu.memory_space<vmem>>) target_semaphore(%arg8 : memref<!tpu.dma_semaphore, #tpu.memory_space<semaphore_mem>>)
      tpu.wait_dma2 semaphore(%arg8 : memref<!tpu.dma_semaphore, #tpu.memory_space<semaphore_mem>>) src(%arg1 : memref<2x8x32xf32, #tpu.memory_space<any>>) dst(%arg6 : memref<2x8x32xf32, #tpu.memory_space<vmem>>)
    } else {
    }
    %c0 = arith.constant 0 : index
    %c0_1 = arith.constant 0 : index
    %c0_2 = arith.constant 0 : index
    %3 = vector.load %arg2[%c0, %c0_1, %c0_2] : memref<1x32x192xf32, #tpu.memory_space<vmem>>, vector<1x32x192xf32>
    %4 = vector.shape_cast %3 : vector<1x32x192xf32> to vector<32x192xf32>
    %c0_3 = arith.constant 0 : index
    %c0_4 = arith.constant 0 : index
    %c0_5 = arith.constant 0 : index
    %5 = vector.load %arg4[%c0_3, %c0_4, %c0_5] : memref<1x8x96xf32, #tpu.memory_space<vmem>>, vector<1x8x96xf32>
    %6 = vector.shape_cast %5 : vector<1x8x96xf32> to vector<8x96xf32>
    %7 = vector.extract_strided_slice %6 {offsets = [0, 0], sizes = [1, 96], strides = [1, 1]} : vector<8x96xf32> to vector<1x96xf32>
    %8 = vector.shape_cast %7 : vector<1x96xf32> to vector<96xf32>
    %9 = vector.extract_strided_slice %6 {offsets = [1, 0], sizes = [1, 32], strides = [1, 1]} : vector<8x96xf32> to vector<1x32xf32>
    %10 = vector.shape_cast %9 : vector<1x32xf32> to vector<32xf32>
    %11 = vector.extract_strided_slice %6 {offsets = [2, 0], sizes = [1, 32], strides = [1, 1]} : vector<8x96xf32> to vector<1x32xf32>
    %12 = vector.shape_cast %11 : vector<1x32xf32> to vector<32xf32>
    %13 = vector.extract_strided_slice %6 {offsets = [3, 0], sizes = [1, 32], strides = [1, 1]} : vector<8x96xf32> to vector<1x32xf32>
    %14 = vector.shape_cast %13 : vector<1x32xf32> to vector<32xf32>
    %15 = vector.extract_strided_slice %6 {offsets = [4, 0], sizes = [1, 64], strides = [1, 1]} : vector<8x96xf32> to vector<1x64xf32>
    %16 = vector.shape_cast %15 : vector<1x64xf32> to vector<64xf32>
    %17 = vector.extract_strided_slice %6 {offsets = [5, 0], sizes = [1, 32], strides = [1, 1]} : vector<8x96xf32> to vector<1x32xf32>
    %18 = vector.shape_cast %17 : vector<1x32xf32> to vector<32xf32>
    %19 = vector.extract_strided_slice %6 {offsets = [6, 0], sizes = [1, 32], strides = [1, 1]} : vector<8x96xf32> to vector<1x32xf32>
    %20 = vector.shape_cast %19 : vector<1x32xf32> to vector<32xf32>
    %21 = vector.extract_strided_slice %6 {offsets = [7, 0], sizes = [1, 32], strides = [1, 1]} : vector<8x96xf32> to vector<1x32xf32>
    %22 = vector.shape_cast %21 : vector<1x32xf32> to vector<32xf32>
    %c0_6 = arith.constant 0 : index
    %c0_7 = arith.constant 0 : index
    %c0_8 = arith.constant 0 : index
    %23 = vector.load %arg6[%c0_6, %c0_7, %c0_8] : memref<2x8x32xf32, #tpu.memory_space<vmem>>, vector<2x8x32xf32>
    %24 = vector.shape_cast %23 : vector<2x8x32xf32> to vector<16x32xf32>
    %25 = vector.extract_strided_slice %4 {offsets = [0, 0], sizes = [32, 96], strides = [1, 1]} : vector<32x192xf32> to vector<32x96xf32>
    %cst = arith.constant dense<0.000000e+00> : vector<16x96xf32>
    %26 = tpu.matmul %24, %25, %cst {dimension_numbers = #tpu.dot_dimension_numbers<[1], [0], [0], [1], [0, 0, 1, 1], [], []>, precision = #tpu.contract_precision<fp32>} : vector<16x32xf32>, vector<32x96xf32>, vector<16x96xf32> -> vector<16x96xf32>
    %27 = vector.shape_cast %8 : vector<96xf32> to vector<1x96xf32>
    %28 = vector.broadcast %27 : vector<1x96xf32> to vector<16x96xf32>
    %29 = arith.addf %26, %28 : vector<16x96xf32>
    %30 = vector.extract_strided_slice %29 {offsets = [0, 0], sizes = [16, 8], strides = [1, 1]} : vector<16x96xf32> to vector<16x8xf32>
    %31 = vector.shape_cast %30 : vector<16x8xf32> to vector<2x8x8xf32>
    %32 = vector.extract_strided_slice %29 {offsets = [0, 8], sizes = [16, 8], strides = [1, 1]} : vector<16x96xf32> to vector<16x8xf32>
    %33 = vector.shape_cast %32 : vector<16x8xf32> to vector<2x8x8xf32>
    %34 = vector.extract_strided_slice %29 {offsets = [0, 16], sizes = [16, 8], strides = [1, 1]} : vector<16x96xf32> to vector<16x8xf32>
    %35 = vector.shape_cast %34 : vector<16x8xf32> to vector<2x8x8xf32>
    %36 = vector.extract_strided_slice %29 {offsets = [0, 24], sizes = [16, 8], strides = [1, 1]} : vector<16x96xf32> to vector<16x8xf32>
    %37 = vector.shape_cast %36 : vector<16x8xf32> to vector<2x8x8xf32>
    %38 = vector.shape_cast %31 : vector<2x8x8xf32> to vector<1x2x8x8xf32>
    %39 = vector.shape_cast %33 : vector<2x8x8xf32> to vector<1x2x8x8xf32>
    %40 = vector.shape_cast %35 : vector<2x8x8xf32> to vector<1x2x8x8xf32>
    %41 = vector.shape_cast %37 : vector<2x8x8xf32> to vector<1x2x8x8xf32>
    %42 = tpu.concatenate %38, %39, %40, %41 in 0 : vector<1x2x8x8xf32>, vector<1x2x8x8xf32>, vector<1x2x8x8xf32>, vector<1x2x8x8xf32> -> vector<4x2x8x8xf32>
    %43 = vector.shape_cast %42 : vector<4x2x8x8xf32> to vector<8x8x8xf32>
    %44 = vector.extract_strided_slice %29 {offsets = [0, 32], sizes = [16, 8], strides = [1, 1]} : vector<16x96xf32> to vector<16x8xf32>
    %45 = vector.shape_cast %44 : vector<16x8xf32> to vector<2x8x8xf32>
    %46 = vector.extract_strided_slice %29 {offsets = [0, 40], sizes = [16, 8], strides = [1, 1]} : vector<16x96xf32> to vector<16x8xf32>
    %47 = vector.shape_cast %46 : vector<16x8xf32> to vector<2x8x8xf32>
    %48 = vector.extract_strided_slice %29 {offsets = [0, 48], sizes = [16, 8], strides = [1, 1]} : vector<16x96xf32> to vector<16x8xf32>
    %49 = vector.shape_cast %48 : vector<16x8xf32> to vector<2x8x8xf32>
    %50 = vector.extract_strided_slice %29 {offsets = [0, 56], sizes = [16, 8], strides = [1, 1]} : vector<16x96xf32> to vector<16x8xf32>
    %51 = vector.shape_cast %50 : vector<16x8xf32> to vector<2x8x8xf32>
    %52 = vector.shape_cast %45 : vector<2x8x8xf32> to vector<1x2x8x8xf32>
    %53 = vector.shape_cast %47 : vector<2x8x8xf32> to vector<1x2x8x8xf32>
    %54 = vector.shape_cast %49 : vector<2x8x8xf32> to vector<1x2x8x8xf32>
    %55 = vector.shape_cast %51 : vector<2x8x8xf32> to vector<1x2x8x8xf32>
    %56 = tpu.concatenate %52, %53, %54, %55 in 0 : vector<1x2x8x8xf32>, vector<1x2x8x8xf32>, vector<1x2x8x8xf32>, vector<1x2x8x8xf32> -> vector<4x2x8x8xf32>
    %57 = vector.shape_cast %56 : vector<4x2x8x8xf32> to vector<8x8x8xf32>
    %58 = vector.extract_strided_slice %29 {offsets = [0, 64], sizes = [16, 8], strides = [1, 1]} : vector<16x96xf32> to vector<16x8xf32>
    %59 = vector.shape_cast %58 : vector<16x8xf32> to vector<2x8x8xf32>
    %60 = vector.extract_strided_slice %29 {offsets = [0, 72], sizes = [16, 8], strides = [1, 1]} : vector<16x96xf32> to vector<16x8xf32>
    %61 = vector.shape_cast %60 : vector<16x8xf32> to vector<2x8x8xf32>
    %62 = vector.extract_strided_slice %29 {offsets = [0, 80], sizes = [16, 8], strides = [1, 1]} : vector<16x96xf32> to vector<16x8xf32>
    %63 = vector.shape_cast %62 : vector<16x8xf32> to vector<2x8x8xf32>
    %64 = vector.extract_strided_slice %29 {offsets = [0, 88], sizes = [16, 8], strides = [1, 1]} : vector<16x96xf32> to vector<16x8xf32>
    %65 = vector.shape_cast %64 : vector<16x8xf32> to vector<2x8x8xf32>
    %66 = vector.shape_cast %59 : vector<2x8x8xf32> to vector<1x2x8x8xf32>
    %67 = vector.shape_cast %61 : vector<2x8x8xf32> to vector<1x2x8x8xf32>
    %68 = vector.shape_cast %63 : vector<2x8x8xf32> to vector<1x2x8x8xf32>
    %69 = vector.shape_cast %65 : vector<2x8x8xf32> to vector<1x2x8x8xf32>
    %70 = tpu.concatenate %66, %67, %68, %69 in 0 : vector<1x2x8x8xf32>, vector<1x2x8x8xf32>, vector<1x2x8x8xf32>, vector<1x2x8x8xf32> -> vector<4x2x8x8xf32>
    %71 = vector.shape_cast %70 : vector<4x2x8x8xf32> to vector<8x8x8xf32>
    "tpu.trace_start"() <{level = 10 : i32, message = "bqd,bkd->bqk"}> : () -> ()
    %cst_9 = arith.constant dense<0.000000e+00> : vector<8x8x8xf32>
    %72 = tpu.matmul %43, %57, %cst_9 {dimension_numbers = #tpu.dot_dimension_numbers<[2], [2], [1], [1], [0, 0, 0, 1, 1, 1], [0], [0]>, precision = #tpu.contract_precision<fp32>} : vector<8x8x8xf32>, vector<8x8x8xf32>, vector<8x8x8xf32> -> vector<8x8x8xf32>
    "tpu.trace_stop"() : () -> ()
    %cst_10 = arith.constant dense<0xFF800000> : vector<8x8xf32>
    %73 = vector.multi_reduction <maximumf>, %72, %cst_10 [2] : vector<8x8x8xf32> to vector<8x8xf32>
    %74 = vector.shape_cast %73 : vector<8x8xf32> to vector<8x8x1xf32>
    %75 = vector.broadcast %74 : vector<8x8x1xf32> to vector<8x8x8xf32>
    %76 = arith.subf %72, %75 : vector<8x8x8xf32>
    %77 = math.exp %76 : vector<8x8x8xf32>
    %cst_11 = arith.constant dense<0.000000e+00> : vector<8x8xf32>
    %78 = vector.multi_reduction <add>, %77, %cst_11 [2] : vector<8x8x8xf32> to vector<8x8xf32>
    %79 = vector.shape_cast %78 : vector<8x8xf32> to vector<8x8x1xf32>
    "tpu.trace_start"() <{level = 10 : i32, message = "bqk,bkd->bqd"}> : () -> ()
    %cst_12 = arith.constant dense<0.000000e+00> : vector<8x8x8xf32>
    %80 = tpu.matmul %77, %71, %cst_12 {dimension_numbers = #tpu.dot_dimension_numbers<[2], [1], [1], [2], [0, 0, 0, 1, 1, 2], [0], [0]>, precision = #tpu.contract_precision<fp32>} : vector<8x8x8xf32>, vector<8x8x8xf32>, vector<8x8x8xf32> -> vector<8x8x8xf32>
    "tpu.trace_stop"() : () -> ()
    %81 = tpu.reciprocal %79 : vector<8x8x1xf32> -> vector<8x8x1xf32>
    %82 = vector.broadcast %81 : vector<8x8x1xf32> to vector<8x8x8xf32>
    %83 = arith.mulf %80, %82 : vector<8x8x8xf32>
    %84 = vector.shape_cast %83 : vector<8x8x8xf32> to vector<4x2x8x8xf32>
    %85 = vector.extract_strided_slice %84 {offsets = [0, 0, 0, 0], sizes = [1, 2, 8, 8], strides = [1, 1, 1, 1]} : vector<4x2x8x8xf32> to vector<1x2x8x8xf32>
    %86 = vector.shape_cast %85 : vector<1x2x8x8xf32> to vector<2x8x8xf32>
    %87 = vector.shape_cast %86 : vector<2x8x8xf32> to vector<16x8xf32>
    %c0_13 = arith.constant 0 : index
    %c0_14 = arith.constant 0 : index
    %88 = vector.load %arg7[%c0_13, %c0_14] : memref<16x32xf32, #tpu.memory_space<vmem>>, vector<16x8xf32>
    tpu.vector_store %arg7[%c0_13, %c0_14], %87 {strides = array<i32>} : memref<16x32xf32, #tpu.memory_space<vmem>>, vector<16x8xf32>,
    %89 = vector.extract_strided_slice %84 {offsets = [1, 0, 0, 0], sizes = [1, 2, 8, 8], strides = [1, 1, 1, 1]} : vector<4x2x8x8xf32> to vector<1x2x8x8xf32>
    %90 = vector.shape_cast %89 : vector<1x2x8x8xf32> to vector<2x8x8xf32>
    %91 = vector.shape_cast %90 : vector<2x8x8xf32> to vector<16x8xf32>
    %c0_15 = arith.constant 0 : index
    %c8 = arith.constant 8 : index
    %92 = vector.load %arg7[%c0_15, %c8] : memref<16x32xf32, #tpu.memory_space<vmem>>, vector<16x8xf32>
    tpu.vector_store %arg7[%c0_15, %c8], %91 {strides = array<i32>} : memref<16x32xf32, #tpu.memory_space<vmem>>, vector<16x8xf32>,
    %93 = vector.extract_strided_slice %84 {offsets = [2, 0, 0, 0], sizes = [1, 2, 8, 8], strides = [1, 1, 1, 1]} : vector<4x2x8x8xf32> to vector<1x2x8x8xf32>
    %94 = vector.shape_cast %93 : vector<1x2x8x8xf32> to vector<2x8x8xf32>
    %95 = vector.shape_cast %94 : vector<2x8x8xf32> to vector<16x8xf32>
    %c0_16 = arith.constant 0 : index
    %c16 = arith.constant 16 : index
    %96 = vector.load %arg7[%c0_16, %c16] : memref<16x32xf32, #tpu.memory_space<vmem>>, vector<16x8xf32>
    tpu.vector_store %arg7[%c0_16, %c16], %95 {strides = array<i32>} : memref<16x32xf32, #tpu.memory_space<vmem>>, vector<16x8xf32>,
    %97 = vector.extract_strided_slice %84 {offsets = [3, 0, 0, 0], sizes = [1, 2, 8, 8], strides = [1, 1, 1, 1]} : vector<4x2x8x8xf32> to vector<1x2x8x8xf32>
    %98 = vector.shape_cast %97 : vector<1x2x8x8xf32> to vector<2x8x8xf32>
    %99 = vector.shape_cast %98 : vector<2x8x8xf32> to vector<16x8xf32>
    %c0_17 = arith.constant 0 : index
    %c24 = arith.constant 24 : index
    %100 = vector.load %arg7[%c0_17, %c24] : memref<16x32xf32, #tpu.memory_space<vmem>>, vector<16x8xf32>
    tpu.vector_store %arg7[%c0_17, %c24], %99 {strides = array<i32>} : memref<16x32xf32, #tpu.memory_space<vmem>>, vector<16x8xf32>,
    %c0_18 = arith.constant 0 : index
    %c0_19 = arith.constant 0 : index
    %101 = vector.load %arg7[%c0_18, %c0_19] : memref<16x32xf32, #tpu.memory_space<vmem>>, vector<16x32xf32>
    %102 = vector.extract_strided_slice %4 {offsets = [0, 96], sizes = [32, 32], strides = [1, 1]} : vector<32x192xf32> to vector<32x32xf32>
    %cst_20 = arith.constant dense<0.000000e+00> : vector<16x32xf32>
    %103 = tpu.matmul %101, %102, %cst_20 {dimension_numbers = #tpu.dot_dimension_numbers<[1], [0], [0], [1], [0, 0, 1, 1], [], []>, precision = #tpu.contract_precision<fp32>} : vector<16x32xf32>, vector<32x32xf32>, vector<16x32xf32> -> vector<16x32xf32>
    %104 = vector.shape_cast %10 : vector<32xf32> to vector<1x32xf32>
    %105 = vector.broadcast %104 : vector<1x32xf32> to vector<16x32xf32>
    %106 = arith.addf %103, %105 : vector<16x32xf32>
    %107 = arith.addf %24, %106 : vector<16x32xf32>
    %cst_21 = arith.constant dense<0.000000e+00> : vector<16xf32>
    %108 = vector.multi_reduction <add>, %107, %cst_21 [1] : vector<16x32xf32> to vector<16xf32>
    %109 = vector.shape_cast %108 : vector<16xf32> to vector<16x1xf32>
    %cst_22 = arith.constant 3.200000e+01 : f32
    %110 = vector.broadcast %cst_22 : f32 to vector<16x1xf32>
    %111 = arith.divf %109, %110 : vector<16x1xf32>
    %112 = vector.broadcast %111 : vector<16x1xf32> to vector<16x32xf32>
    %113 = arith.subf %107, %112 : vector<16x32xf32>
    %114 = arith.mulf %113, %113 : vector<16x32xf32>
    %cst_23 = arith.constant dense<0.000000e+00> : vector<16xf32>
    %115 = vector.multi_reduction <add>, %114, %cst_23 [1] : vector<16x32xf32> to vector<16xf32>
    %116 = vector.shape_cast %115 : vector<16xf32> to vector<16x1xf32>
    %cst_24 = arith.constant 3.200000e+01 : f32
    %117 = vector.broadcast %cst_24 : f32 to vector<16x1xf32>
    %118 = arith.divf %116, %117 : vector<16x1xf32>
    %119 = vector.broadcast %111 : vector<16x1xf32> to vector<16x32xf32>
    %120 = arith.subf %107, %119 : vector<16x32xf32>
    %cst_25 = arith.constant 9.99999974E-6 : f32
    %121 = vector.broadcast %cst_25 : f32 to vector<16x1xf32>
    %122 = arith.addf %118, %121 : vector<16x1xf32>
    %123 = math.rsqrt %122 : vector<16x1xf32>
    %124 = vector.broadcast %123 : vector<16x1xf32> to vector<16x32xf32>
    %125 = arith.mulf %120, %124 : vector<16x32xf32>
    %126 = vector.shape_cast %12 : vector<32xf32> to vector<1x32xf32>
    %127 = vector.broadcast %126 : vector<1x32xf32> to vector<16x32xf32>
    %128 = arith.mulf %125, %127 : vector<16x32xf32>
    %129 = vector.shape_cast %14 : vector<32xf32> to vector<1x32xf32>
    %130 = vector.broadcast %129 : vector<1x32xf32> to vector<16x32xf32>
    %131 = arith.addf %128, %130 : vector<16x32xf32>
    %132 = vector.extract_strided_slice %4 {offsets = [0, 128], sizes = [32, 64], strides = [1, 1]} : vector<32x192xf32> to vector<32x64xf32>
    %cst_26 = arith.constant dense<0.000000e+00> : vector<16x64xf32>
    %133 = tpu.matmul %131, %132, %cst_26 {dimension_numbers = #tpu.dot_dimension_numbers<[1], [0], [0], [1], [0, 0, 1, 1], [], []>, precision = #tpu.contract_precision<fp32>} : vector<16x32xf32>, vector<32x64xf32>, vector<16x64xf32> -> vector<16x64xf32>
    %134 = vector.shape_cast %16 : vector<64xf32> to vector<1x64xf32>
    %135 = vector.broadcast %134 : vector<1x64xf32> to vector<16x64xf32>
    %136 = arith.addf %133, %135 : vector<16x64xf32>
    %cst_27 = arith.constant 0.000000e+00 : f32
    %137 = vector.broadcast %cst_27 : f32 to vector<16x64xf32>
    %138 = arith.maximumf %136, %137 : vector<16x64xf32>
    %c0_28 = arith.constant 0 : index
    %c0_29 = arith.constant 0 : index
    %c0_30 = arith.constant 0 : index
    %139 = vector.load %arg3[%c0_28, %c0_29, %c0_30] : memref<1x64x32xf32, #tpu.memory_space<vmem>>, vector<1x64x32xf32>
    %140 = vector.shape_cast %139 : vector<1x64x32xf32> to vector<64x32xf32>
    %cst_31 = arith.constant dense<0.000000e+00> : vector<16x32xf32>
    %141 = tpu.matmul %138, %140, %cst_31 {dimension_numbers = #tpu.dot_dimension_numbers<[1], [0], [0], [1], [0, 0, 1, 1], [], []>, precision = #tpu.contract_precision<fp32>} : vector<16x64xf32>, vector<64x32xf32>, vector<16x32xf32> -> vector<16x32xf32>
    %142 = vector.shape_cast %18 : vector<32xf32> to vector<1x32xf32>
    %143 = vector.broadcast %142 : vector<1x32xf32> to vector<16x32xf32>
    %144 = arith.addf %141, %143 : vector<16x32xf32>
    %145 = arith.addf %131, %144 : vector<16x32xf32>
    %cst_32 = arith.constant dense<0.000000e+00> : vector<16xf32>
    %146 = vector.multi_reduction <add>, %145, %cst_32 [1] : vector<16x32xf32> to vector<16xf32>
    %147 = vector.shape_cast %146 : vector<16xf32> to vector<16x1xf32>
    %cst_33 = arith.constant 3.200000e+01 : f32
    %148 = vector.broadcast %cst_33 : f32 to vector<16x1xf32>
    %149 = arith.divf %147, %148 : vector<16x1xf32>
    %150 = vector.broadcast %149 : vector<16x1xf32> to vector<16x32xf32>
    %151 = arith.subf %145, %150 : vector<16x32xf32>
    %152 = arith.mulf %151, %151 : vector<16x32xf32>
    %cst_34 = arith.constant dense<0.000000e+00> : vector<16xf32>
    %153 = vector.multi_reduction <add>, %152, %cst_34 [1] : vector<16x32xf32> to vector<16xf32>
    %154 = vector.shape_cast %153 : vector<16xf32> to vector<16x1xf32>
    %cst_35 = arith.constant 3.200000e+01 : f32
    %155 = vector.broadcast %cst_35 : f32 to vector<16x1xf32>
    %156 = arith.divf %154, %155 : vector<16x1xf32>
    %157 = vector.broadcast %149 : vector<16x1xf32> to vector<16x32xf32>
    %158 = arith.subf %145, %157 : vector<16x32xf32>
    %cst_36 = arith.constant 9.99999974E-6 : f32
    %159 = vector.broadcast %cst_36 : f32 to vector<16x1xf32>
    %160 = arith.addf %156, %159 : vector<16x1xf32>
    %161 = math.rsqrt %160 : vector<16x1xf32>
    %162 = vector.broadcast %161 : vector<16x1xf32> to vector<16x32xf32>
    %163 = arith.mulf %158, %162 : vector<16x32xf32>
    %164 = vector.shape_cast %20 : vector<32xf32> to vector<1x32xf32>
    %165 = vector.broadcast %164 : vector<1x32xf32> to vector<16x32xf32>
    %166 = arith.mulf %163, %165 : vector<16x32xf32>
    %167 = vector.shape_cast %22 : vector<32xf32> to vector<1x32xf32>
    %168 = vector.broadcast %167 : vector<1x32xf32> to vector<16x32xf32>
    %169 = arith.addf %166, %168 : vector<16x32xf32>
    %170 = vector.shape_cast %169 : vector<16x32xf32> to vector<2x8x32xf32>
    %c0_37 = arith.constant 0 : index
    %c0_38 = arith.constant 0 : index
    %c0_39 = arith.constant 0 : index
    %171 = vector.load %arg6[%c0_37, %c0_38, %c0_39] : memref<2x8x32xf32, #tpu.memory_space<vmem>>, vector<2x8x32xf32>
    tpu.vector_store %arg6[%c0_37, %c0_38, %c0_39], %170 {strides = array<i32>} : memref<2x8x32xf32, #tpu.memory_space<vmem>>, vector<2x8x32xf32>,
    %c1_i32 = arith.constant 1 : i32
    %172 = arith.cmpi eq, %arg0, %c1_i32 : i32
    %173 = arith.extui %172 : i1 to i32
    %c0_i32_40 = arith.constant 0 : i32
    %174 = arith.cmpi ne, %173, %c0_i32_40 : i32
    scf.if %174 {
      %175 = vector.shape_cast %169 : vector<16x32xf32> to vector<2x8x32xf32>
      %176 = vector.extract_strided_slice %175 {offsets = [0, 7, 0], sizes = [2, 1, 32], strides = [1, 1, 1]} : vector<2x8x32xf32> to vector<2x1x32xf32>
      %c0_41 = arith.constant 0 : index
      %c0_42 = arith.constant 0 : index
      %c0_43 = arith.constant 0 : index
      %177 = vector.load %arg5[%c0_41, %c0_42, %c0_43] : memref<2x1x32xf32, #tpu.memory_space<vmem>>, vector<2x1x32xf32>
      tpu.vector_store %arg5[%c0_41, %c0_42, %c0_43], %176 {strides = array<i32>} : memref<2x1x32xf32, #tpu.memory_space<vmem>>, vector<2x1x32xf32>,
    } else {
    }
    return
  }
  func.func @transform_1(%arg0: i32) -> (i32, i32, i32) {
    %c0_i32 = arith.constant 0 : i32
    %c0_i32_0 = arith.constant 0 : i32
    %c0_i32_1 = arith.constant 0 : i32
    return %arg0, %c0_i32, %c0_i32_0 : i32, i32, i32
  }
  func.func @transform_2(%arg0: i32) -> (i32, i32, i32) {
    %c0_i32 = arith.constant 0 : i32
    %c0_i32_0 = arith.constant 0 : i32
    %c0_i32_1 = arith.constant 0 : i32
    return %arg0, %c0_i32, %c0_i32_0 : i32, i32, i32
  }
  func.func @transform_3(%arg0: i32) -> (i32, i32, i32) {
    %c0_i32 = arith.constant 0 : i32
    %c0_i32_0 = arith.constant 0 : i32
    %c0_i32_1 = arith.constant 0 : i32
    return %arg0, %c0_i32, %c0_i32_0 : i32, i32, i32
  }
  func.func @transform_4(%arg0: i32) -> (i32, i32, i32) {
    %c0_i32 = arith.constant 0 : i32
    %c0_i32_0 = arith.constant 0 : i32
    %c0_i32_1 = arith.constant 0 : i32
    %c0_i32_2 = arith.constant 0 : i32
    return %c0_i32, %c0_i32_0, %c0_i32_1 : i32, i32, i32
  }
}

</mosaic_0001>

<bundles_post_ra>
// kernel: tpu_custom_call.1
= control target key start
LH: loop header
LB: loop body
LE: loop exit
PB: predicated region body
PF: predicated region fallthrough
CT: control target
= control target key end

     0   :  { %9 = vsyncpa [#allocation6], 0  ;;  %s11808_s15 = smov 0   ;;  %s12600_s0 = inlined_call_operand.vmem [shape: f32[2,8,32], index: 0, kind: input, shape index: {}]   ;;  %s12601_s1 = inlined_call_operand.vmem [shape: f32[2,32,192], index: 1, kind: input, shape index: {}]   ;;  %s12602_s2 = inlined_call_operand.vmem [shape: f32[2,64,32], index: 2, kind: input, shape index: {}]   ;;  %s12603_s3 = inlined_call_operand.vmem [shape: f32[2,8,96], index: 3, kind: input, shape index: {}]   ;;  %s12604_s4 = inlined_call_operand.hbm [shape: f32[2,1,32], index: 4, kind: output, shape index: {}]  }
   0x1 LB: > { %s11814_s16 = sadd.s32 4294967295, %s11768_s15   ;;  %p10041_p0 = scmp.ge.s32.totalorder %s11768_s15, 1  ;;  %s11768_s15 = sphi %s11808_s15, %s15_s15  }
   0x2   : > { %p153_p1 = scmp.lt.s32.totalorder %s11768_s15, 3 }
   0x4   : > { %p154_p2 = pnand %p10041_p0, %p153_p1 }
   0x5   : > { %p181_p3 = scmp.lt.s32.totalorder (!%p154_p2), %s11814_s16, 1  ;;  %p10047_p4 = scmp.ne.s32.totalorder (!%p154_p2), %s11814_s16, 0 }
   0x6   : > { %157 = sbr.rel (%p154_p2) target bundleno = 2909 (0xb5d), region = 32 }
   0xd   : > { %s182_s17 = scalar_select %p181_p3, %s11814_s16, 1 }
   0xe   : > { %198 = sbr.rel (%p10047_p4) target bundleno = 24 (0x18), region = 36  ;;  %v231_v0 = vld [vmem:[%s12600_s0] sm:$0xff] (!%p10047_p4)  ;;  %v233_v1 = vld [vmem:[%s12600_s0 + $0x8] sm:$0xff] (!%p10047_p4) }
   0xf   : > { %s10054_s18 = sshll.u32 %s182_s17, 6  ;;  %s10046_s19 = sshll.u32 %s182_s17, 3  ;;  %232 = vst [vmem:[#allocation2] sm:$0xff] (!%p10047_p4), %v231_v0  ;;  %234 = vst [vmem:[#allocation2 + $0x8] sm:$0xff] (!%p10047_p4), %v233_v1 }
  0x10   : > { %s11823_s22 = scalar_lea.vmem %s12601_s1, %s10054_s18  ;;  %s11828_s25 = scalar_lea.vmem %s12602_s2, %s10054_s18 }
  0x11   : > { %s11833_s28 = scalar_lea.vmem %s12603_s3, %s10046_s19 }
  0x15   : > { %242 = vsyncadd [#allocation4], 256 }
  0x16   : > { %11760 = dma.done.wait [#allocation4], 256 }
  0x17   : > { %11761 = vsyncadd [#allocation4], 4294967040 }
  0x18 PF: > { %v247_v2 = vld [vmem:[%s11823_s22] sm:$0xff]  ;;  %v249_v3 = vld [vmem:[%s11823_s22 + $0x10] sm:$0xff]  ;;  %vm262_vm0 = vcmask 261120   ;;  %v258_v48 = vlaneseq  ;;  %v11770_v51 = vmov 0.0   ;;  %vm11771_vm1 = vmmov 0   ;;  %s11772_s7 = smov 120  }
  0x19   : > { %v251_v4 = vld [vmem:[%s11823_s22 + $0x20] sm:$0xff]  ;;  %v270_v5 = vand.u32 4294901760, %v247_v2  ;;  %v273_v6 = vand.u32 4294901760, %v249_v3  ;;  %v253_v7 = vld [vmem:[%s11823_s22 + $0x30] sm:$0xff]  ;;  %v257_v10 = vld [vmem:[#allocation2 + $0x8] sm:$0xff]  ;;  %10482 = vmatprep.subr.mxu1 %v11770_v51  ;;  %10484 = vmatprep.mubr.msk.f32.mxu1 %vm11771_vm1, %v11770_v51  ;;  %s11773_s8 = smov 96  }
  0x1a   : > { %v276_v8 = vand.u32 4294901760, %v251_v4  ;;  %v256_v9 = vld [vmem:[#allocation2] sm:$0xff]  ;;  %v279_v11 = vand.u32 4294901760, %v253_v7  ;;  %v267_v13 = vsel %vm262_vm0, %v257_v10, 0  ;;  %v11876_v49 = vshrl.u32 %v258_v48, 7  ;;  %s11774_s9 = smov 112  }
  0x1b   : > { %v264_v12 = vsel %vm262_vm0, %v256_v9, 0  ;;  %v11848_v14 = vpack.c.bf16 %v273_v6, %v270_v5  ;;  %v11852_v16 = vand.u32 4294901760, %v267_v13  ;;  %v360_v17 = vsub.f32 %v247_v2, %v270_v5  ;;  %v255_v52 = vld [vmem:[%s11833_s28] sm:$0xff]  ;;  %s11775_s10 = smov 104   ;;  %s11776_s11 = smov 64  }
  0x1c   : > { %v11850_v15 = vand.u32 4294901760, %v264_v12  ;;  %v11854_v18 = vpack.c.bf16 %v279_v11, %v276_v8  ;;  %v367_v19 = vsub.f32 %v249_v3, %v273_v6  ;;  %v374_v20 = vsub.f32 %v251_v4, %v276_v8  ;;  %s11777_s12 = smov 8   ;;  %s11778_s13 = smov 16  }
  0x1d   : > { %v381_v21 = vsub.f32 %v253_v7, %v279_v11  ;;  %11209 = vmatprep.subr.bf16.mxu0 %v11848_v14  ;;  %v349_v23 = vsub.f32 %v267_v13, %v11852_v16  ;;  %v361_v24 = vand.u32 4294901760, %v360_v17  ;;  %v260_v50 = vsub.s32 0, %v11876_v49  ;;  %s11779_s14 = smov 24   ;;  %s11780_s17 = smov 32  }
  0x1e   : > { %v339_v22 = vsub.f32 %v264_v12, %v11850_v15  ;;  %11211 = vmatpush3.bf16.msra.mxu0 %v11848_v14  ;;  %v368_v25 = vand.u32 4294901760, %v367_v19  ;;  %v375_v26 = vand.u32 4294901760, %v374_v20  ;;  %v11224_v44 = vpack.c.bf16 %v367_v19, %v360_v17  ;;  %p10048_p5 = scmp.ne.s32.totalorder %s11814_s16, 1 }
  0x1f   : > { %v382_v27 = vand.u32 4294901760, %v381_v21  ;;  %11213 = vmatprep.subr.bf16.mxu0 %v11854_v18  ;;  %v350_v29 = vand.u32 4294901760, %v349_v23  ;;  %v362_v30 = vsub.f32 %v360_v17, %v361_v24  ;;  %v11228_v45 = vpack.c.bf16 %v381_v21, %v374_v20 }
  0x20   : > { %v340_v28 = vand.u32 4294901760, %v339_v22  ;;  %v369_v31 = vsub.f32 %v367_v19, %v368_v25  ;;  %v376_v32 = vsub.f32 %v374_v20, %v375_v26  ;;  %v11240_v46 = vpack.c.bf16 %v368_v25, %v361_v24 }
  0x21   : > { %v383_v33 = vsub.f32 %v381_v21, %v382_v27  ;;  %v351_v35 = vsub.f32 %v349_v23, %v350_v29  ;;  %v363_v36 = vand.u32 4294901760, %v362_v30  ;;  %v11244_v47 = vpack.c.bf16 %v382_v27, %v375_v26 }
  0x22   : > { %v341_v34 = vsub.f32 %v339_v22, %v340_v28  ;;  %11215 = vmatpush3.bf16.msra.mxu0 %v11854_v18  ;;  %v370_v37 = vand.u32 4294901760, %v369_v31  ;;  %v377_v38 = vand.u32 4294901760, %v376_v32  ;;  %v261_v53 = vrot.slane %v255_v52, %v260_v50 }
  0x23   : > { %v384_v39 = vand.u32 4294901760, %v383_v33  ;;  %v352_v41 = vand.u32 4294901760, %v351_v35  ;;  %vm813_vm2 = vcmask 64512   ;;  %vm8142_vm3 = vcmask 130112  }
  0x24   : > { %v342_v40 = vand.u32 4294901760, %v341_v34  ;;  %v11216_v42 = vpack.c.bf16 %v370_v37, %v363_v36  ;;  %vm8153_vm4 = vcmask 195712   ;;  %vm8164_vm5 = vcmask 261312  }
  0x25   : > { %v11220_v43 = vpack.c.bf16 %v384_v39, %v377_v38  ;;  %vm9316_vm6 = vcmask 523264   ;;  %vm9949_vm7 = vcmask (!%p10048_p5), 261127  }
  0x26   : > { %10424 = vmatprep.mubr.f32.mxu0 %v342_v40  ;;  %11217 = vmatprep.subr.bf16.mxu0 %v11216_v42 }
  0x27   : > { %10425 = vmatmul.mubr.f32.vlgmr.msra.gmra.mrb[0].mxu0 %v352_v41 }
  0x28   : > { %11219 = vmatpush3.bf16.msra.mxu0 %v11216_v42  ;;  %10435 = vmatprep.mubr.f32.mxu0 %v11850_v15 }
  0x29   : > { %11221 = vmatprep.subr.bf16.mxu0 %v11220_v43 }
  0x2c   : > { %11223 = vmatpush3.bf16.msra.mxu0 %v11220_v43 }
  0x2d   : > { %11225 = vmatprep.subr.bf16.mxu0 %v11224_v44 }
  0x2f   : > { %10436 = vmatmul.mubr.f32.vlgmr.msra.gmra.mrb[0].mxu0 %v11852_v16 }
  0x30   : > { %11227 = vmatpush3.bf16.msra.mxu0 %v11224_v44  ;;  %10446 = vmatprep.mubr.f32.mxu0 %v339_v22 }
  0x31   : > { %11229 = vmatprep.subr.bf16.mxu0 %v11228_v45 }
  0x34   : > { %11231 = vmatpush3.bf16.msra.mxu0 %v11228_v45 }
  0x35   : > { %11233 = vmatprep.subr.bf16.mxu0 %v11848_v14 }
  0x37   : > { %10447 = vmatmul.mubr.f32.vlgmr.msra.gmra.mrb[0].mxu0 %v349_v23 }
  0x38   : > { %11235 = vmatpush3.bf16.msra.mxu0 %v11848_v14  ;;  %10457 = vmatprep.mubr.f32.mxu0 %v340_v28 }
  0x39   : > { %11237 = vmatprep.subr.bf16.mxu0 %v11854_v18 }
  0x3c   : > { %11239 = vmatpush3.bf16.msra.mxu0 %v11854_v18 }
  0x3d   : > { %11241 = vmatprep.subr.bf16.mxu0 %v11240_v46 }
  0x3f   : > { %10458 = vmatmul.mubr.f32.vlgmr.msra.gmra.mrb[0].mxu0 %v350_v29 }
  0x40   : > { %11243 = vmatpush3.bf16.msra.mxu0 %v11240_v46  ;;  %10468 = vmatprep.mubr.f32.mxu0 %v11850_v15 }
  0x41   : > { %11245 = vmatprep.subr.bf16.mxu0 %v11244_v47 }
  0x44   : > { %11247 = vmatpush3.bf16.msra.mxu0 %v11244_v47 }
  0x45   : > { %11249 = vmatprep.subr.bf16.mxu0 %v11848_v14 }
  0x47   : > { %10469 = vmatmul.mubr.f32.vlgmr.msra.gmra.mrb[0].mxu0 %v11852_v16 }
  0x48   : > { %11251 = vmatpush3.bf16.msra.mxu0 %v11848_v14  ;;  %10479 = vmatprep.mubr.f32.mxu0 %v11850_v15 }
  0x49   : > { %11253 = vmatprep.subr.bf16.mxu0 %v11854_v18 }
  0x4c   : > { %11255 = vmatpush3.bf16.msra.mxu0 %v11854_v18 }
  0x4d   : > { %10542 = vmatprep.subr.mxu0 %v11770_v51 }
  0x4f   : > { %10480 = vmatmul.mubr.f32.vlgmr.msra.gmra.mrb[0].mxu0 %v11852_v16 }
  0x50   : > { %10544 = vmatprep.mubr.msk.f32.mxu0 %vm11771_vm1, %v11770_v51 }
 0x122   : > { %v10481_v54 = vpop.f32.mrb[0].mxu0 }
 0x123   : > { %v11886_v55 = vadd.f32 %v10481_v54, %v261_v53  ;;  %v787_v56 = vpop.f32.mrb[1].mxu0 }
 0x124   : > { %v11888_v57 = vadd.f32 %v787_v56, %v261_v53 }
 0x125   : > { %801 = vrot.lane.b32.xlu1 %v11886_v55, %s11772_s7  ;;  %v1266_v12 = vsel %vm813_vm2, %v11886_v55, 0 }
 0x126   : > { %811 = vrot.lane.b32.xlu0 %v11888_v57, %s11773_s8  ;;  %v814_v58 = vsel %vm813_vm2, %v11888_v57, 0  ;;  %v1336_v14 = vand.u32 4294901760, %v1266_v12 }
 0x127   : > { %v884_v59 = vand.u32 4294901760, %v814_v58 }
 0x128   : > { %v1337_v16 = vsub.f32 %v1266_v12, %v1336_v14 }
 0x129   : > { %1264 = vrot.lane.b32.xlu1 %v11886_v55, %s11773_s8  ;;  %v885_v60 = vsub.f32 %v814_v58, %v884_v59 }
 0x12a   : > { %799 = vrot.lane.b32.xlu0 %v11888_v57, %s11772_s7  ;;  %v1338_v18 = vand.u32 4294901760, %v1337_v16 }
 0x12b   : > { %v886_v61 = vand.u32 4294901760, %v885_v60 }
 0x12c   : > { %v1339_v20 = vsub.f32 %v1337_v16, %v1338_v18 }
 0x12d   : > { %805 = vrot.lane.b32.xlu1 %v11886_v55, %s11774_s9  ;;  %v887_v1 = vsub.f32 %v885_v60, %v886_v61 }
 0x12e   : > { %803 = vrot.lane.b32.xlu0 %v11888_v57, %s11774_s9  ;;  %v1340_v22 = vand.u32 4294901760, %v1339_v20 }
 0x12f   : > { %v888_v6 = vand.u32 4294901760, %v887_v1 }
 0x197   : > { %v11900_v62 = vpop.permute.xlu1 %801 }
 0x198   : > { %2168 = vrot.lane.b32.xlu1 %v11900_v62, %s11773_s8  ;;  %v812_v63 = vpop.permute.xlu0 %811  ;;  %v2170_v24 = vsel %vm813_vm2, %v11900_v62, 0 }
 0x199   : > { %v816_v0 = vsel %vm813_vm2, %v812_v63, 0  ;;  %v11960_v25 = vand.u32 4294901760, %v2170_v24 }
 0x19a   : > { %v819_v2 = vand.u32 4294901760, %v816_v0 }
 0x19b   : > { %v1265_v3 = vpop.permute.xlu1 %1264  ;;  %v2241_v27 = vsub.f32 %v2170_v24, %v11960_v25 }
 0x19c   : > { %v896_v4 = vsub.f32 %v816_v0, %v819_v2  ;;  %809 = vrot.lane.b32.xlu1 %v11886_v55, %s11775_s10  ;;  %10483 = vmatpush3.xpose.msra.mxu1 %v819_v2  ;;  %v11906_v5 = vpop.permute.xlu0 %799  ;;  %v1268_v13 = vsel %vm813_vm2, %v1265_v3, 0 }
 0x19d   : > { %1716 = vrot.lane.b32.xlu0 %v11906_v5, %s11773_s8  ;;  %10487 = vmatprep.subr.mxu1 %v11770_v51  ;;  %v1271_v15 = vand.u32 4294901760, %v1268_v13  ;;  %v1718_v26 = vsel %vm813_vm2, %v11906_v5, 0  ;;  %v2242_v29 = vand.u32 4294901760, %v2241_v27 }
 0x19e   : > { %v897_v7 = vand.u32 4294901760, %v896_v4  ;;  %v11965_v28 = vand.u32 4294901760, %v1718_v26 }
 0x19f   : > { %v11911_v8 = vpop.permute.xlu1 %805  ;;  %10485 = vmatmul.mubr.f32.vlgmr.msra.gmra.mrb[0].mxu1 %v888_v6  ;;  %v1348_v17 = vsub.f32 %v1268_v13, %v1271_v15  ;;  %v2243_v33 = vsub.f32 %v2241_v27, %v2242_v29 }
 0x1a0   : > { %v898_v9 = vsub.f32 %v896_v4, %v897_v7  ;;  %3072 = vrot.lane.b32.xlu1 %v11911_v8, %s11773_s8  ;;  %10489 = vmatprep.mubr.msk.f32.mxu1 %vm11771_vm1, %v11770_v51  ;;  %v11918_v11 = vpop.permute.xlu0 %803  ;;  %v11968_v30 = vsub.f32 %v1718_v26, %v11965_v28  ;;  %v3074_v56 = vsel %vm813_vm2, %v11911_v8, 0 }
 0x1a1   : > { %807 = vrot.lane.b32.xlu0 %v11888_v57, %s11775_s10  ;;  %v1349_v19 = vand.u32 4294901760, %v1348_v17  ;;  %v2244_v39 = vand.u32 4294901760, %v2243_v33  ;;  %v2622_v63 = vsel %vm813_vm2, %v11918_v11, 0 }
 0x1a2   : > { %v899_v10 = vand.u32 4294901760, %v898_v9  ;;  %v1790_v34 = vand.u32 4294901760, %v11968_v30 }
 0x1a3   : > { %v1350_v21 = vsub.f32 %v1348_v17, %v1349_v19 }
 0x1a4   : > { %10488 = vmatpush3.xpose.msra.mxu1 %v899_v10  ;;  %v1791_v42 = vsub.f32 %v11968_v30, %v1790_v34 }
 0x1a5   : > { %2620 = vrot.lane.b32.xlu0 %v11918_v11, %s11773_s8  ;;  %10492 = vmatprep.subr.mxu1 %v11770_v51  ;;  %v1351_v23 = vand.u32 4294901760, %v1350_v21 }
 0x1a6   : > { %v1792_v48 = vand.u32 4294901760, %v1791_v42 }
 0x1a7   : > { %10490 = vmatmul.mubr.f32.vlgmr.msra.gmra.mrb[0].mxu1 %v884_v59 }
 0x1a8   : > { %10493 = vmatpush3.xpose.msra.mxu1 %v896_v4  ;;  %10494 = vmatprep.mubr.msk.f32.mxu1 %vm11771_vm1, %v11770_v51 }
 0x1a9   : > { %10497 = vmatprep.subr.mxu1 %v11770_v51 }
 0x1af   : > { %10495 = vmatmul.mubr.f32.vlgmr.msra.gmra.mrb[0].mxu1 %v885_v60 }
 0x1b0   : > { %10498 = vmatpush3.xpose.msra.mxu1 %v819_v2  ;;  %10499 = vmatprep.mubr.msk.f32.mxu1 %vm11771_vm1, %v11770_v51 }
 0x1b1   : > { %10502 = vmatprep.subr.mxu1 %v11770_v51 }
 0x1b7   : > { %10500 = vmatmul.mubr.f32.vlgmr.msra.gmra.mrb[0].mxu1 %v886_v61 }
 0x1b8   : > { %10503 = vmatpush3.xpose.msra.mxu1 %v897_v7  ;;  %10504 = vmatprep.mubr.msk.f32.mxu1 %vm11771_vm1, %v11770_v51 }
 0x1b9   : > { %10507 = vmatprep.subr.mxu1 %v11770_v51 }
 0x1bf   : > { %10505 = vmatmul.mubr.f32.vlgmr.msra.gmra.mrb[0].mxu1 %v884_v59 }
 0x1c0   : > { %10508 = vmatpush3.xpose.msra.mxu1 %v819_v2  ;;  %10509 = vmatprep.mubr.msk.f32.mxu1 %vm11771_vm1, %v11770_v51  ;;  %v12031_v2 = vand.u32 4294901760, %v2622_v63 }
 0x1c1   : > { %10512 = vmatprep.subr.mxu1 %v11770_v51 }
 0x1c2   : > { %v2693_v7 = vsub.f32 %v2622_v63, %v12031_v2 }
 0x1c4   : > { %v2694_v13 = vand.u32 4294901760, %v2693_v7 }
 0x1c7   : > { %10510 = vmatmul.mubr.f32.vlgmr.msra.gmra.mrb[0].mxu1 %v884_v59  ;;  %v12020_v59 = vand.u32 4294901760, %v3074_v56 }
 0x1c8   : > { %10513 = vmatpush3.xpose.msra.mxu1 %v1271_v15  ;;  %10514 = vmatprep.mubr.msk.f32.mxu1 %vm11771_vm1, %v11770_v51 }
 0x1c9   : > { %10517 = vmatprep.subr.mxu1 %v11770_v51  ;;  %v3145_v1 = vsub.f32 %v3074_v56, %v12020_v59 }
 0x1cb   : > { %10515 = vmatmul.mubr.f32.vlgmr.msra.gmra.mrb[2].mxu1 %v1340_v22  ;;  %v3146_v6 = vand.u32 4294901760, %v3145_v1 }
 0x1cc   : > { %10518 = vmatpush3.xpose.msra.mxu1 %v1351_v23  ;;  %10519 = vmatprep.mubr.msk.f32.mxu1 %vm11771_vm1, %v11770_v51 }
 0x1cd   : > { %10522 = vmatprep.subr.mxu1 %v11770_v51  ;;  %v3147_v12 = vsub.f32 %v3145_v1, %v3146_v6 }
 0x1d3   : > { %10520 = vmatmul.mubr.f32.vlgmr.msra.gmra.mrb[2].mxu1 %v1336_v14 }
 0x1d4   : > { %10523 = vmatpush3.xpose.msra.mxu1 %v1348_v17  ;;  %10524 = vmatprep.mubr.msk.f32.mxu1 %vm11771_vm1, %v11770_v51 }
 0x1d5   : > { %10527 = vmatprep.subr.mxu1 %v11770_v51 }
 0x1db   : > { %10525 = vmatmul.mubr.f32.vlgmr.msra.gmra.mrb[2].mxu1 %v1337_v16  ;;  %v3148_v16 = vand.u32 4294901760, %v3147_v12 }
 0x1dc   : > { %10528 = vmatpush3.xpose.msra.mxu1 %v1271_v15  ;;  %10529 = vmatprep.mubr.msk.f32.mxu1 %vm11771_vm1, %v11770_v51 }
 0x1dd   : > { %10532 = vmatprep.subr.mxu1 %v11770_v51 }
 0x1e3   : > { %10530 = vmatmul.mubr.f32.vlgmr.msra.gmra.mrb[2].mxu1 %v1338_v18  ;;  %v2695_v18 = vsub.f32 %v2693_v7, %v2694_v13 }
 0x1e4   : > { %10533 = vmatpush3.xpose.msra.mxu1 %v1349_v19  ;;  %10534 = vmatprep.mubr.msk.f32.mxu1 %vm11771_vm1, %v11770_v51 }
 0x1e5   : > { %10537 = vmatprep.subr.mxu1 %v11770_v51  ;;  %v2696_v20 = vand.u32 4294901760, %v2695_v18 }
 0x1eb   : > { %10535 = vmatmul.mubr.f32.vlgmr.msra.gmra.mrb[2].mxu1 %v1336_v14 }
 0x1ec   : > { %10538 = vmatpush3.xpose.msra.mxu1 %v1271_v15  ;;  %10539 = vmatprep.mubr.msk.f32.mxu1 %vm11771_vm1, %v11770_v51 }
 0x1ed   : > { %10572 = vmatprep.subr.mxu1 %v11770_v51 }
 0x1f3   : > { %10540 = vmatmul.mubr.f32.vlgmr.msra.gmra.mrb[2].mxu1 %v1336_v14 }
 0x1f4   : > { %10574 = vmatprep.mubr.msk.f32.mxu1 %vm11771_vm1, %v11770_v51 }
 0x20a   : > { %v2169_v31 = vpop.permute.xlu1 %2168 }
 0x20b   : > { %v2172_v32 = vsel %vm813_vm2, %v2169_v31, 0 }
 0x20c   : > { %v11972_v35 = vand.u32 4294901760, %v2172_v32 }
 0x20e   : > { %v2252_v36 = vsub.f32 %v2172_v32, %v11972_v35  ;;  %v11975_v37 = vpop.permute.xlu1 %809  ;;  %10573 = vmatpush3.xpose.msra.mxu1 %v11972_v35 }
 0x20f   : > { %3976 = vrot.lane.b32.xlu1 %v11975_v37, %s11773_s8  ;;  %v1717_v38 = vpop.permute.xlu0 %1716  ;;  %10577 = vmatprep.subr.mxu1 %v11770_v51  ;;  %v3978_v22 = vsel %vm813_vm2, %v11975_v37, 0 }
 0x210   : > { %v2253_v40 = vand.u32 4294901760, %v2252_v36  ;;  %v1720_v41 = vsel %vm813_vm2, %v1717_v38, 0  ;;  %v12105_v23 = vand.u32 4294901760, %v3978_v22 }
 0x211   : > { %v11983_v43 = vand.u32 4294901760, %v1720_v41  ;;  %10575 = vmatmul.mubr.f32.vlgmr.msra.gmra.mrb[4].mxu1 %v2244_v39 }
 0x212   : > { %v2254_v44 = vsub.f32 %v2252_v36, %v2253_v40  ;;  %10579 = vmatprep.mubr.msk.f32.mxu1 %vm11771_vm1, %v11770_v51  ;;  %v3073_v54 = vpop.permute.xlu1 %3072 }
 0x213   : > { %v1800_v45 = vsub.f32 %v1720_v41, %v11983_v43  ;;  %10543 = vmatpush3.xpose.msra.mxu0 %v11983_v43  ;;  %v11989_v46 = vpop.permute.xlu0 %807  ;;  %v3076_v58 = vsel %vm813_vm2, %v3073_v54, 0 }
 0x214   : > { %v2255_v47 = vand.u32 4294901760, %v2254_v44  ;;  %3524 = vrot.lane.b32.xlu0 %v11989_v46, %s11773_s8  ;;  %10547 = vmatprep.subr.mxu0 %v11770_v51  ;;  %v12023_v61 = vand.u32 4294901760, %v3076_v58  ;;  %v3526_v24 = vsel %vm813_vm2, %v11989_v46, 0 }
 0x215   : > { %v1801_v50 = vand.u32 4294901760, %v1800_v45  ;;  %v12110_v26 = vand.u32 4294901760, %v3526_v24 }
 0x216   : > { %10545 = vmatmul.mubr.f32.vlgmr.msra.gmra.mrb[2].mxu0 %v1792_v48  ;;  %10578 = vmatpush3.xpose.msra.mxu1 %v2255_v47  ;;  %v3156_v3 = vsub.f32 %v3076_v58, %v12023_v61 }
 0x217   : > { %v1802_v52 = vsub.f32 %v1800_v45, %v1801_v50  ;;  %10582 = vmatprep.subr.mxu1 %v11770_v51  ;;  %10549 = vmatprep.mubr.msk.f32.mxu0 %vm11771_vm1, %v11770_v51  ;;  %v2621_v60 = vpop.permute.xlu0 %2620 }
 0x218   : > { %v2624_v0 = vsel %vm813_vm2, %v2621_v60, 0  ;;  %v3157_v9 = vand.u32 4294901760, %v3156_v3 }
 0x219   : > { %v1803_v53 = vand.u32 4294901760, %v1802_v52  ;;  %10580 = vmatmul.mubr.f32.vlgmr.msra.gmra.mrb[4].mxu1 %v11960_v25  ;;  %v12035_v4 = vand.u32 4294901760, %v2624_v0 }
 0x21a   : > { %10583 = vmatpush3.xpose.msra.mxu1 %v2252_v36  ;;  %10584 = vmatprep.mubr.msk.f32.mxu1 %vm11771_vm1, %v11770_v51  ;;  %v3158_v14 = vsub.f32 %v3156_v3, %v3157_v9 }
 0x21b   : > { %10548 = vmatpush3.xpose.msra.mxu0 %v1803_v53  ;;  %10587 = vmatprep.subr.mxu1 %v11770_v51  ;;  %v2704_v10 = vsub.f32 %v2624_v0, %v12035_v4 }
 0x21c   : > { %10552 = vmatprep.subr.mxu0 %v11770_v51  ;;  %v3159_v17 = vand.u32 4294901760, %v3158_v14 }
 0x21d   : > { %v2705_v15 = vand.u32 4294901760, %v2704_v10 }
 0x21e   : > { %10550 = vmatmul.mubr.f32.vlgmr.msra.gmra.mrb[2].mxu0 %v11965_v28 }
 0x21f   : > { %10553 = vmatpush3.xpose.msra.mxu0 %v1800_v45  ;;  %10554 = vmatprep.mubr.msk.f32.mxu0 %vm11771_vm1, %v11770_v51  ;;  %v2706_v19 = vsub.f32 %v2704_v10, %v2705_v15 }
 0x220   : > { %10557 = vmatprep.subr.mxu0 %v11770_v51 }
 0x221   : > { %10585 = vmatmul.mubr.f32.vlgmr.msra.gmra.mrb[4].mxu1 %v2241_v27  ;;  %v2707_v21 = vand.u32 4294901760, %v2706_v19 }
 0x222   : > { %10588 = vmatpush3.xpose.msra.mxu1 %v11972_v35  ;;  %10589 = vmatprep.mubr.msk.f32.mxu1 %vm11771_vm1, %v11770_v51 }
 0x223   : > { %10592 = vmatprep.subr.mxu1 %v11770_v51 }
 0x226   : > { %10555 = vmatmul.mubr.f32.vlgmr.msra.gmra.mrb[2].mxu0 %v11968_v30 }
 0x227   : > { %10558 = vmatpush3.xpose.msra.mxu0 %v11983_v43  ;;  %10559 = vmatprep.mubr.msk.f32.mxu0 %vm11771_vm1, %v11770_v51 }
 0x228   : > { %10562 = vmatprep.subr.mxu0 %v11770_v51 }
 0x229   : > { %10590 = vmatmul.mubr.f32.vlgmr.msra.gmra.mrb[4].mxu1 %v2242_v29 }
 0x22a   : > { %10593 = vmatpush3.xpose.msra.mxu1 %v2253_v40  ;;  %10594 = vmatprep.mubr.msk.f32.mxu1 %vm11771_vm1, %v11770_v51 }
 0x22b   : > { %10597 = vmatprep.subr.mxu1 %v11770_v51 }
 0x22e   : > { %10560 = vmatmul.mubr.f32.vlgmr.msra.gmra.mrb[2].mxu0 %v1790_v34 }
 0x22f   : > { %10563 = vmatpush3.xpose.msra.mxu0 %v1801_v50  ;;  %10564 = vmatprep.mubr.msk.f32.mxu0 %vm11771_vm1, %v11770_v51 }
 0x230   : > { %10567 = vmatprep.subr.mxu0 %v11770_v51 }
 0x231   : > { %10595 = vmatmul.mubr.f32.vlgmr.msra.gmra.mrb[4].mxu1 %v11960_v25 }
 0x232   : > { %10598 = vmatpush3.xpose.msra.mxu1 %v11972_v35  ;;  %10599 = vmatprep.mubr.msk.f32.mxu1 %vm11771_vm1, %v11770_v51 }
 0x233   : > { %10632 = vmatprep.subr.mxu1 %v11770_v51 }
 0x236   : > { %10565 = vmatmul.mubr.f32.vlgmr.msra.gmra.mrb[2].mxu0 %v11965_v28 }
 0x237   : > { %10568 = vmatpush3.xpose.msra.mxu0 %v11983_v43  ;;  %10569 = vmatprep.mubr.msk.f32.mxu0 %vm11771_vm1, %v11770_v51 }
 0x238   : > { %10602 = vmatprep.subr.mxu0 %v11770_v51 }
 0x239   : > { %10600 = vmatmul.mubr.f32.vlgmr.msra.gmra.mrb[4].mxu1 %v11960_v25  ;;  %v4049_v25 = vsub.f32 %v3978_v22, %v12105_v23 }
 0x23a   : > { %10633 = vmatpush3.xpose.msra.mxu1 %v12023_v61  ;;  %10634 = vmatprep.mubr.msk.f32.mxu1 %vm11771_vm1, %v11770_v51 }
 0x23b   : > { %10637 = vmatprep.subr.mxu1 %v11770_v51  ;;  %v4050_v27 = vand.u32 4294901760, %v4049_v25 }
 0x23d   : > { %10635 = vmatmul.mubr.f32.vlgmr.msra.gmra.mrb[6].mxu1 %v3148_v16  ;;  %v4051_v31 = vsub.f32 %v4049_v25, %v4050_v27 }
 0x23e   : > { %10638 = vmatpush3.xpose.msra.mxu1 %v3159_v17  ;;  %10570 = vmatmul.mubr.f32.vlgmr.msra.gmra.mrb[2].mxu0 %v11965_v28  ;;  %v3597_v28 = vsub.f32 %v3526_v24, %v12110_v26 }
 0x23f   : > { %10603 = vmatpush3.xpose.msra.mxu0 %v12035_v4  ;;  %10604 = vmatprep.mubr.msk.f32.mxu0 %vm11771_vm1, %v11770_v51  ;;  %v4052_v36 = vand.u32 4294901760, %v4051_v31 }
 0x240   : > { %10607 = vmatprep.subr.mxu0 %v11770_v51  ;;  %10639 = vmatprep.mubr.msk.f32.mxu1 %vm11771_vm1, %v11770_v51  ;;  %v3598_v32 = vand.u32 4294901760, %v3597_v28 }
 0x241   : > { %10642 = vmatprep.subr.mxu1 %v11770_v51 }
 0x242   : > { %10605 = vmatmul.mubr.f32.vlgmr.msra.gmra.mrb[4].mxu0 %v2696_v20  ;;  %v3599_v40 = vsub.f32 %v3597_v28, %v3598_v32 }
 0x243   : > { %10608 = vmatpush3.xpose.msra.mxu0 %v2707_v21  ;;  %10609 = vmatprep.mubr.msk.f32.mxu0 %vm11771_vm1, %v11770_v51 }
 0x244   : > { %10612 = vmatprep.subr.mxu0 %v11770_v51  ;;  %v3600_v45 = vand.u32 4294901760, %v3599_v40 }
 0x245   : > { %10640 = vmatmul.mubr.f32.vlgmr.msra.gmra.mrb[6].mxu1 %v12020_v59 }
 0x246   : > { %10643 = vmatpush3.xpose.msra.mxu1 %v3156_v3  ;;  %10644 = vmatprep.mubr.msk.f32.mxu1 %vm11771_vm1, %v11770_v51 }
 0x247   : > { %10647 = vmatprep.subr.mxu1 %v11770_v51 }
 0x24a   : > { %10610 = vmatmul.mubr.f32.vlgmr.msra.gmra.mrb[4].mxu0 %v12031_v2 }
 0x24b   : > { %10613 = vmatpush3.xpose.msra.mxu0 %v2704_v10  ;;  %10614 = vmatprep.mubr.msk.f32.mxu0 %vm11771_vm1, %v11770_v51 }
 0x24c   : > { %10617 = vmatprep.subr.mxu0 %v11770_v51 }
 0x24d   : > { %10645 = vmatmul.mubr.f32.vlgmr.msra.gmra.mrb[6].mxu1 %v3145_v1 }
 0x24e   : > { %10648 = vmatpush3.xpose.msra.mxu1 %v12023_v61  ;;  %10649 = vmatprep.mubr.msk.f32.mxu1 %vm11771_vm1, %v11770_v51 }
 0x24f   : > { %10652 = vmatprep.subr.mxu1 %v11770_v51 }
 0x252   : > { %10615 = vmatmul.mubr.f32.vlgmr.msra.gmra.mrb[4].mxu0 %v2693_v7 }
 0x253   : > { %10618 = vmatpush3.xpose.msra.mxu0 %v12035_v4  ;;  %10619 = vmatprep.mubr.msk.f32.mxu0 %vm11771_vm1, %v11770_v51 }
 0x254   : > { %10622 = vmatprep.subr.mxu0 %v11770_v51 }
 0x255   : > { %10650 = vmatmul.mubr.f32.vlgmr.msra.gmra.mrb[6].mxu1 %v3146_v6 }
 0x256   : > { %10653 = vmatpush3.xpose.msra.mxu1 %v3157_v9  ;;  %10654 = vmatprep.mubr.msk.f32.mxu1 %vm11771_vm1, %v11770_v51 }
 0x257   : > { %10657 = vmatprep.subr.mxu1 %v11770_v51 }
 0x25a   : > { %10620 = vmatmul.mubr.f32.vlgmr.msra.gmra.mrb[4].mxu0 %v2694_v13 }
 0x25b   : > { %10623 = vmatpush3.xpose.msra.mxu0 %v2705_v15  ;;  %10624 = vmatprep.mubr.msk.f32.mxu0 %vm11771_vm1, %v11770_v51 }
 0x25c   : > { %10627 = vmatprep.subr.mxu0 %v11770_v51 }
 0x25d   : > { %10655 = vmatmul.mubr.f32.vlgmr.msra.gmra.mrb[6].mxu1 %v12020_v59 }
 0x25e   : > { %10658 = vmatpush3.xpose.msra.mxu1 %v12023_v61  ;;  %10659 = vmatprep.mubr.msk.f32.mxu1 %vm11771_vm1, %v11770_v51 }
 0x25f   : > { %10692 = vmatprep.subr.mxu1 %v11770_v51 }
 0x262   : > { %10625 = vmatmul.mubr.f32.vlgmr.msra.gmra.mrb[4].mxu0 %v12031_v2 }
 0x263   : > { %10628 = vmatpush3.xpose.msra.mxu0 %v12035_v4  ;;  %10629 = vmatprep.mubr.msk.f32.mxu0 %vm11771_vm1, %v11770_v51 }
 0x264   : > { %10662 = vmatprep.subr.mxu0 %v11770_v51 }
 0x265   : > { %10660 = vmatmul.mubr.f32.vlgmr.msra.gmra.mrb[6].mxu1 %v12020_v59 }
 0x266   : > { %10694 = vmatprep.mubr.msk.f32.mxu1 %vm11771_vm1, %v11770_v51 }
 0x26a   : > { %10630 = vmatmul.mubr.f32.vlgmr.msra.gmra.mrb[4].mxu0 %v12031_v2 }
 0x26b   : > { %10664 = vmatprep.mubr.msk.f32.mxu0 %vm11771_vm1, %v11770_v51 }
 0x281   : > { %v3977_v29 = vpop.permute.xlu1 %3976 }
 0x282   : > { %v3980_v30 = vsel %vm813_vm2, %v3977_v29, 0 }
 0x283   : > { %v3983_v33 = vand.u32 4294901760, %v3980_v30 }
 0x285   : > { %v4060_v34 = vsub.f32 %v3980_v30, %v3983_v33  ;;  %10693 = vmatpush3.xpose.msra.mxu1 %v3983_v33 }
 0x286   : > { %v3525_v35 = vpop.permute.xlu0 %3524  ;;  %10697 = vmatprep.subr.mxu1 %v11770_v51 }
 0x287   : > { %v4061_v38 = vand.u32 4294901760, %v4060_v34  ;;  %v3528_v39 = vsel %vm813_vm2, %v3525_v35, 0 }
 0x288   : > { %v3531_v41 = vand.u32 4294901760, %v3528_v39  ;;  %10695 = vmatmul.mubr.f32.vlgmr.msra.gmra.mrb[8].mxu1 %v4052_v36 }
 0x289   : > { %v4062_v42 = vsub.f32 %v4060_v34, %v4061_v38  ;;  %10699 = vmatprep.mubr.msk.f32.mxu1 %vm11771_vm1, %v11770_v51 }
 0x28a   : > { %v3608_v43 = vsub.f32 %v3528_v39, %v3531_v41  ;;  %10663 = vmatpush3.xpose.msra.mxu0 %v3531_v41 }
 0x28b   : > { %v4063_v44 = vand.u32 4294901760, %v4062_v42  ;;  %10667 = vmatprep.subr.mxu0 %v11770_v51 }
 0x28c   : > { %v3609_v47 = vand.u32 4294901760, %v3608_v43 }
 0x28d   : > { %10665 = vmatmul.mubr.f32.vlgmr.msra.gmra.mrb[6].mxu0 %v3600_v45  ;;  %10698 = vmatpush3.xpose.msra.mxu1 %v4063_v44 }
 0x28e   : > { %v3610_v48 = vsub.f32 %v3608_v43, %v3609_v47  ;;  %10702 = vmatprep.subr.mxu1 %v11770_v51  ;;  %10669 = vmatprep.mubr.msk.f32.mxu0 %vm11771_vm1, %v11770_v51 }
 0x290   : > { %v3611_v50 = vand.u32 4294901760, %v3610_v48  ;;  %10700 = vmatmul.mubr.f32.vlgmr.msra.gmra.mrb[8].mxu1 %v12105_v23 }
 0x291   : > { %10703 = vmatpush3.xpose.msra.mxu1 %v4060_v34  ;;  %10704 = vmatprep.mubr.msk.f32.mxu1 %vm11771_vm1, %v11770_v51 }
 0x292   : > { %10668 = vmatpush3.xpose.msra.mxu0 %v3611_v50  ;;  %10707 = vmatprep.subr.mxu1 %v11770_v51 }
 0x293   : > { %10672 = vmatprep.subr.mxu0 %v11770_v51 }
 0x295   : > { %10670 = vmatmul.mubr.f32.vlgmr.msra.gmra.mrb[6].mxu0 %v12110_v26 }
 0x296   : > { %10673 = vmatpush3.xpose.msra.mxu0 %v3608_v43  ;;  %10674 = vmatprep.mubr.msk.f32.mxu0 %vm11771_vm1, %v11770_v51 }
 0x297   : > { %10677 = vmatprep.subr.mxu0 %v11770_v51 }
 0x298   : > { %10705 = vmatmul.mubr.f32.vlgmr.msra.gmra.mrb[8].mxu1 %v4049_v25 }
 0x299   : > { %10708 = vmatpush3.xpose.msra.mxu1 %v3983_v33  ;;  %10709 = vmatprep.mubr.msk.f32.mxu1 %vm11771_vm1, %v11770_v51 }
 0x29a   : > { %v1260_v52 = vpop.f32.mrb[0].mxu1  ;;  %10712 = vmatprep.subr.mxu1 %v11770_v51 }
 0x29b   : > { %v10511_v53 = vpop.f32.mrb[1].mxu1  ;;  %v4428_v54 = vsel %vm813_vm2, %v1260_v52, -inf }
 0x29c   : > { %4429 = vmax.xlane.f32.xlu0 %v4428_v54 }
 0x29d   : > { %10675 = vmatmul.mubr.f32.vlgmr.msra.gmra.mrb[6].mxu0 %v3597_v28 }
 0x29e   : > { %10678 = vmatpush3.xpose.msra.mxu0 %v3531_v41  ;;  %10679 = vmatprep.mubr.msk.f32.mxu0 %vm11771_vm1, %v11770_v51 }
 0x29f   : > { %10682 = vmatprep.subr.mxu0 %v11770_v51 }
 0x2a0   : > { %10710 = vmatmul.mubr.f32.vlgmr.msra.gmra.mrb[8].mxu1 %v4050_v27 }
 0x2a1   : > { %10713 = vmatpush3.xpose.msra.mxu1 %v4061_v38  ;;  %10714 = vmatprep.mubr.msk.f32.mxu1 %vm11771_vm1, %v11770_v51 }
 0x2a2   : > { %10717 = vmatprep.subr.mxu1 %v11770_v51 }
 0x2a5   : > { %10680 = vmatmul.mubr.f32.vlgmr.msra.gmra.mrb[6].mxu0 %v3598_v32 }
 0x2a6   : > { %10683 = vmatpush3.xpose.msra.mxu0 %v3609_v47  ;;  %10684 = vmatprep.mubr.msk.f32.mxu0 %vm11771_vm1, %v11770_v51 }
 0x2a7   : > { %10687 = vmatprep.subr.mxu0 %v11770_v51 }
 0x2a8   : > { %10715 = vmatmul.mubr.f32.vlgmr.msra.gmra.mrb[8].mxu1 %v12105_v23 }
 0x2a9   : > { %10718 = vmatpush3.xpose.msra.mxu1 %v3983_v33  ;;  %10719 = vmatprep.mubr.msk.f32.mxu1 %vm11771_vm1, %v11770_v51 }
 0x2aa   : > { %10752 = vmatprep.subr.mxu1 %v11770_v51 }
 0x2ad   : > { %10685 = vmatmul.mubr.f32.vlgmr.msra.gmra.mrb[6].mxu0 %v12110_v26 }
 0x2ae   : > { %10688 = vmatpush3.xpose.msra.mxu0 %v3531_v41  ;;  %10689 = vmatprep.mubr.msk.f32.mxu0 %vm11771_vm1, %v11770_v51 }
 0x2af   : > { %10722 = vmatprep.subr.mxu0 %v11770_v51 }
 0x2b0   : > { %10720 = vmatmul.mubr.f32.vlgmr.msra.gmra.mrb[8].mxu1 %v12105_v23 }
 0x2b1   : > { %10754 = vmatprep.mubr.msk.f32.mxu1 %vm11771_vm1, %v11770_v51 }
 0x2b2   : > { %4500 = vrot.lane.b32.xlu0 %v11888_v57, %s11776_s11 }
 0x2b5   : > { %10690 = vmatmul.mubr.f32.vlgmr.msra.gmra.mrb[6].mxu0 %v12110_v26 }
 0x2b6   : > { %10724 = vmatprep.mubr.msk.f32.mxu0 %vm11771_vm1, %v11770_v51 }
 0x2c6   : > { %v1712_v56 = vpop.f32.mrb[2].mxu1 }
 0x2c7   : > { %v10541_v58 = vpop.f32.mrb[3].mxu1  ;;  %v4431_v59 = vsel %vm813_vm2, %v1712_v56, -inf }
 0x2c8   : > { %4432 = vmax.xlane.f32.xlu1 %v4431_v59 }
 0x2d9   : > { %4952 = vrot.lane.b32.xlu1 %v11886_v55, %s11776_s11 }
 0x30c   : > { %v12163_v60 = vpop.f32.mrb[4].mxu1 }
 0x30d   : > { %v10601_v61 = vpop.f32.mrb[5].mxu1  ;;  %v4437_v63 = vsel %vm813_vm2, %v12163_v60, -inf }
 0x30e   : > { %4438 = vmax.xlane.f32.xlu1 %v4437_v63 }
 0x311   : > { %v12167_v57 = vpop.f32.mrb[2].mxu0 }
 0x312   : > { %v10571_v0 = vpop.f32.mrb[3].mxu0  ;;  %v4434_v1 = vsel %vm813_vm2, %v12167_v57, -inf }
 0x313   : > { %4435 = vmax.xlane.f32.xlu0 %v4434_v1 }
 0x31f   : > { %5856 = vrot.lane.b32.xlu1 %v11900_v62, %s11776_s11 }
 0x329   : > { %5404 = vrot.lane.b32.xlu0 %v11906_v5, %s11776_s11  ;;  %v4430_v55 = vpop.xlane.xlu0 %4429 }
 0x32a   : > { %v4452_v2 = vsub.f32 %v1260_v52, %v4430_v55 }
 0x32c   : > { %v4460_v3 = vmul.f32 1.442695, %v4452_v2 }
 0x32d   : > { %v4501_v4 = vpop.permute.xlu0 %4500 }
 0x32e   : > { %11683 = vpow2.f32 %v4460_v3  ;;  %v4507_v6 = vand.u32 4294901760, %v4501_v4 }
 0x330   : > { %10723 = vmatpush3.msra.mxu0 %v4507_v6  ;;  %v4584_v7 = vsub.f32 %v4501_v4, %v4507_v6 }
 0x331   : > { %10727 = vmatprep.subr.mxu0 %v11770_v51 }
 0x332   : > { %v4585_v5 = vand.u32 4294901760, %v4584_v7 }
 0x334   : > { %v4586_v18 = vsub.f32 %v4584_v7, %v4585_v5 }
 0x336   : > { %v4587_v22 = vand.u32 4294901760, %v4586_v18 }
 0x338   : > { %v12176_v9 = vpop.eup %11683  ;;  %v12178_v10 = vpop.f32.mrb[6].mxu1 }
 0x339   : > { %v4504_v62 = vsel %vm813_vm2, %v12176_v9, 0  ;;  %v10661_v12 = vpop.f32.mrb[7].mxu1  ;;  %v4443_v20 = vsel %vm813_vm2, %v12178_v10, -inf }
 0x33a   : > { %v4572_v13 = vand.u32 4294901760, %v4504_v62 }
 0x33c   : > { %v4573_v14 = vsub.f32 %v4504_v62, %v4572_v13 }
 0x33d   : > { %v12182_v15 = vpop.f32.mrb[4].mxu0 }
 0x33e   : > { %v10631_v16 = vpop.f32.mrb[5].mxu0  ;;  %v4574_v17 = vand.u32 4294901760, %v4573_v14  ;;  %v4440_v23 = vsel %vm813_vm2, %v12182_v15, -inf }
 0x340   : > { %v4575_v19 = vsub.f32 %v4573_v14, %v4574_v17 }
 0x342   : > { %v4576_v21 = vand.u32 4294901760, %v4575_v19 }
 0x343   : > { %4444 = vmax.xlane.f32.xlu1 %v4443_v20 }
 0x344   : > { %10725 = vmatmul.mubr.f32.vlgmr.msra.gmra.mrb[8].mxu0 %v4576_v21 }
 0x345   : > { %10728 = vmatpush3.msra.mxu0 %v4587_v22  ;;  %10729 = vmatprep.mubr.msk.f32.mxu0 %vm11771_vm1, %v11770_v51 }
 0x346   : > { %10732 = vmatprep.subr.mxu0 %v11770_v51 }
 0x348   : > { %4441 = vmax.xlane.f32.xlu0 %v4440_v23 }
 0x34c   : > { %10730 = vmatmul.mubr.f32.vlgmr.msra.gmra.mrb[8].mxu0 %v4572_v13 }
 0x34d   : > { %10733 = vmatpush3.msra.mxu0 %v4584_v7  ;;  %10734 = vmatprep.mubr.msk.f32.mxu0 %vm11771_vm1, %v11770_v51 }
 0x34e   : > { %10737 = vmatprep.subr.mxu0 %v11770_v51 }
 0x354   : > { %10735 = vmatmul.mubr.f32.vlgmr.msra.gmra.mrb[8].mxu0 %v4573_v14  ;;  %6760 = vrot.lane.b32.xlu1 %v11911_v8, %s11776_s11 }
 0x355   : > { %10738 = vmatpush3.msra.mxu0 %v4507_v6  ;;  %v4433_v24 = vpop.xlane.xlu1 %4432  ;;  %10739 = vmatprep.mubr.msk.f32.mxu0 %vm11771_vm1, %v11770_v51 }
 0x356   : > { %v4453_v25 = vsub.f32 %v1712_v56, %v4433_v24  ;;  %10742 = vmatprep.subr.mxu0 %v11770_v51 }
 0x358   : > { %v4462_v26 = vmul.f32 1.442695, %v4453_v25 }
 0x359   : > { %v4953_v27 = vpop.permute.xlu1 %4952 }
 0x35a   : > { %11685 = vpow2.f32 %v4462_v26  ;;  %v4959_v28 = vand.u32 4294901760, %v4953_v27 }
 0x35c   : > { %10740 = vmatmul.mubr.f32.vlgmr.msra.gmra.mrb[8].mxu0 %v4574_v17  ;;  %10753 = vmatpush3.msra.mxu1 %v4959_v28  ;;  %v5036_v8 = vsub.f32 %v4953_v27, %v4959_v28 }
 0x35d   : > { %10743 = vmatpush3.msra.mxu0 %v4585_v5  ;;  %10744 = vmatprep.mubr.msk.f32.mxu0 %vm11771_vm1, %v11770_v51 }
 0x35e   : > { %6308 = vrot.lane.b32.xlu0 %v11918_v11, %s11776_s11  ;;  %10747 = vmatprep.subr.mxu0 %v11770_v51  ;;  %v5037_v32 = vand.u32 4294901760, %v5036_v8 }
 0x35f   : > { %10757 = vmatprep.subr.mxu1 %v11770_v51 }
 0x360   : > { %v5038_v34 = vsub.f32 %v5036_v8, %v5037_v32 }
 0x362   : > { %v5039_v38 = vand.u32 4294901760, %v5038_v34 }
 0x364   : > { %v12205_v29 = vpop.eup %11685  ;;  %10745 = vmatmul.mubr.f32.vlgmr.msra.gmra.mrb[8].mxu0 %v4572_v13 }
 0x365   : > { %v4956_v30 = vsel %vm813_vm2, %v12205_v29, 0  ;;  %10748 = vmatpush3.msra.mxu0 %v4507_v6  ;;  %10749 = vmatprep.mubr.msk.f32.mxu0 %vm11771_vm1, %v11770_v51 }
 0x366   : > { %v5024_v31 = vand.u32 4294901760, %v4956_v30  ;;  %10782 = vmatprep.subr.mxu0 %v11770_v51 }
 0x368   : > { %v5025_v11 = vsub.f32 %v4956_v30, %v5024_v31 }
 0x36a   : > { %v5026_v33 = vand.u32 4294901760, %v5025_v11 }
 0x36c   : > { %10750 = vmatmul.mubr.f32.vlgmr.msra.gmra.mrb[8].mxu0 %v4572_v13  ;;  %v5027_v35 = vsub.f32 %v5025_v11, %v5026_v33 }
 0x36d   : > { %10784 = vmatprep.mubr.msk.f32.mxu0 %vm11771_vm1, %v11770_v51 }
 0x36e   : > { %v5028_v36 = vand.u32 4294901760, %v5027_v35 }
 0x370   : > { %10755 = vmatmul.mubr.f32.vlgmr.msra.gmra.mrb[10].mxu1 %v5028_v36 }
 0x371   : > { %10758 = vmatpush3.msra.mxu1 %v5039_v38  ;;  %10759 = vmatprep.mubr.msk.f32.mxu1 %vm11771_vm1, %v11770_v51 }
 0x372   : > { %10762 = vmatprep.subr.mxu1 %v11770_v51 }
 0x378   : > { %10760 = vmatmul.mubr.f32.vlgmr.msra.gmra.mrb[10].mxu1 %v5024_v31 }
 0x379   : > { %10763 = vmatpush3.msra.mxu1 %v5036_v8  ;;  %10764 = vmatprep.mubr.msk.f32.mxu1 %vm11771_vm1, %v11770_v51 }
 0x37a   : > { %10767 = vmatprep.subr.mxu1 %v11770_v51 }
 0x380   : > { %10765 = vmatmul.mubr.f32.vlgmr.msra.gmra.mrb[10].mxu1 %v5025_v11 }
 0x381   : > { %10768 = vmatpush3.msra.mxu1 %v4959_v28  ;;  %10769 = vmatprep.mubr.msk.f32.mxu1 %vm11771_vm1, %v11770_v51 }
 0x382   : > { %10772 = vmatprep.subr.mxu1 %v11770_v51 }
 0x383   : > { %v12223_v39 = vpop.f32.mrb[8].mxu1 }
 0x384   : > { %v10721_v40 = vpop.f32.mrb[9].mxu1  ;;  %v4449_v41 = vsel %vm813_vm2, %v12223_v39, -inf }
 0x385   : > { %4450 = vmax.xlane.f32.xlu1 %v4449_v41 }
 0x388   : > { %v12227_v42 = vpop.f32.mrb[6].mxu0  ;;  %10770 = vmatmul.mubr.f32.vlgmr.msra.gmra.mrb[10].mxu1 %v5026_v33 }
 0x389   : > { %10773 = vmatpush3.msra.mxu1 %v5037_v32  ;;  %v10691_v43 = vpop.f32.mrb[7].mxu0  ;;  %v4446_v44 = vsel %vm813_vm2, %v12227_v42, -inf  ;;  %10774 = vmatprep.mubr.msk.f32.mxu1 %vm11771_vm1, %v11770_v51 }
 0x38a   : > { %4447 = vmax.xlane.f32.xlu0 %v4446_v44  ;;  %10777 = vmatprep.subr.mxu1 %v11770_v51 }
 0x390   : > { %10775 = vmatmul.mubr.f32.vlgmr.msra.gmra.mrb[10].mxu1 %v5024_v31 }
 0x391   : > { %10778 = vmatpush3.msra.mxu1 %v4959_v28  ;;  %10779 = vmatprep.mubr.msk.f32.mxu1 %vm11771_vm1, %v11770_v51 }
 0x392   : > { %10812 = vmatprep.subr.mxu1 %v11770_v51 }
 0x396   : > { %7664 = vrot.lane.b32.xlu1 %v11975_v37, %s11776_s11 }
 0x398   : > { %10780 = vmatmul.mubr.f32.vlgmr.msra.gmra.mrb[10].mxu1 %v5024_v31 }
 0x399   : > { %10814 = vmatprep.mubr.msk.f32.mxu1 %vm11771_vm1, %v11770_v51 }
 0x39b   : > { %v4439_v45 = vpop.xlane.xlu1 %4438 }
 0x39c   : > { %v4455_v47 = vsub.f32 %v12163_v60, %v4439_v45 }
 0x39e   : > { %v4466_v48 = vmul.f32 1.442695, %v4455_v47 }
 0x39f   : > { %v5857_v50 = vpop.permute.xlu1 %5856 }
 0x3a0   : > { %11687 = vpow2.f32 %v4466_v48  ;;  %v12242_v52 = vand.u32 4294901760, %v5857_v50  ;;  %7212 = vrot.lane.b32.xlu0 %v11989_v46, %s11776_s11  ;;  %v4436_v53 = vpop.xlane.xlu0 %4435 }
 0x3a1   : > { %v4454_v54 = vsub.f32 %v12167_v57, %v4436_v53 }
 0x3a2   : > { %10813 = vmatpush3.msra.mxu1 %v12242_v52  ;;  %v5940_v59 = vsub.f32 %v5857_v50, %v12242_v52 }
 0x3a3   : > { %v4464_v37 = vmul.f32 1.442695, %v4454_v54  ;;  %10817 = vmatprep.subr.mxu1 %v11770_v51 }
 0x3a4   : > { %v5405_v56 = vpop.permute.xlu0 %5404  ;;  %v5941_v63 = vand.u32 4294901760, %v5940_v59 }
 0x3a5   : > { %11689 = vpow2.f32 %v4464_v37  ;;  %v12249_v58 = vand.u32 4294901760, %v5405_v56 }
 0x3a6   : > { %v5942_v3 = vsub.f32 %v5940_v59, %v5941_v63 }
 0x3a7   : > { %10783 = vmatpush3.msra.mxu0 %v12249_v58  ;;  %v5488_v57 = vsub.f32 %v5405_v56, %v12249_v58 }
 0x3a8   : > { %10787 = vmatprep.subr.mxu0 %v11770_v51  ;;  %v5943_v13 = vand.u32 4294901760, %v5942_v3 }
 0x3a9   : > { %v5489_v6 = vand.u32 4294901760, %v5488_v57 }
 0x3aa   : > { %v11688_v60 = vpop.eup %11687 }
 0x3ab   : > { %v5860_v46 = vsel %vm813_vm2, %v11688_v60, 0  ;;  %v5490_v14 = vsub.f32 %v5488_v57, %v5489_v6  ;;  %v4485_v17 = vsel %vm813_vm2, %v11688_v60, 0.0 }
 0x3ac   : > { %v12255_v61 = vand.u32 4294901760, %v5860_v46 }
 0x3ad   : > { %v5491_v19 = vand.u32 4294901760, %v5490_v14 }
 0x3ae   : > { %v5929_v0 = vsub.f32 %v5860_v46, %v12255_v61 }
 0x3af   : > { %v11690_v1 = vpop.eup %11689 }
 0x3b0   : > { %v5408_v55 = vsel %vm813_vm2, %v11690_v1, 0  ;;  %v5930_v2 = vand.u32 4294901760, %v5929_v0  ;;  %v4482_v20 = vsel %vm813_vm2, %v11690_v1, 0.0 }
 0x3b1   : > { %v12260_v4 = vand.u32 4294901760, %v5408_v55 }
 0x3b2   : > { %v5931_v7 = vsub.f32 %v5929_v0, %v5930_v2 }
 0x3b3   : > { %v5477_v62 = vsub.f32 %v5408_v55, %v12260_v4 }
 0x3b4   : > { %v5932_v12 = vand.u32 4294901760, %v5931_v7 }
 0x3b5   : > { %v5478_v5 = vand.u32 4294901760, %v5477_v62 }
 0x3b6   : > { %10815 = vmatmul.mubr.f32.vlgmr.msra.gmra.mrb[12].mxu1 %v5932_v12 }
 0x3b7   : > { %10818 = vmatpush3.msra.mxu1 %v5943_v13  ;;  %v5479_v16 = vsub.f32 %v5477_v62, %v5478_v5  ;;  %10819 = vmatprep.mubr.msk.f32.mxu1 %vm11771_vm1, %v11770_v51 }
 0x3b8   : > { %10822 = vmatprep.subr.mxu1 %v11770_v51 }
 0x3b9   : > { %v5480_v18 = vand.u32 4294901760, %v5479_v16 }
 0x3ba   : > { %4486 = vadd.xlane.f32.xlu1 %v4485_v17 }
 0x3bb   : > { %10785 = vmatmul.mubr.f32.vlgmr.msra.gmra.mrb[10].mxu0 %v5480_v18 }
 0x3bc   : > { %10788 = vmatpush3.msra.mxu0 %v5491_v19  ;;  %10789 = vmatprep.mubr.msk.f32.mxu0 %vm11771_vm1, %v11770_v51 }
 0x3bd   : > { %10792 = vmatprep.subr.mxu0 %v11770_v51 }
 0x3be   : > { %10820 = vmatmul.mubr.f32.vlgmr.msra.gmra.mrb[12].mxu1 %v12255_v61 }
 0x3bf   : > { %10823 = vmatpush3.msra.mxu1 %v5940_v59  ;;  %4483 = vadd.xlane.f32.xlu0 %v4482_v20 }
 0x3c0   : > { %10824 = vmatprep.mubr.msk.f32.mxu1 %vm11771_vm1, %v11770_v51  ;;  %10827 = vmatprep.subr.mxu1 %v11770_v51 }
 0x3c3   : > { %10790 = vmatmul.mubr.f32.vlgmr.msra.gmra.mrb[10].mxu0 %v12260_v4 }
 0x3c4   : > { %10793 = vmatpush3.msra.mxu0 %v5488_v57  ;;  %10794 = vmatprep.mubr.msk.f32.mxu0 %vm11771_vm1, %v11770_v51 }
 0x3c5   : > { %10797 = vmatprep.subr.mxu0 %v11770_v51 }
 0x3c6   : > { %10825 = vmatmul.mubr.f32.vlgmr.msra.gmra.mrb[12].mxu1 %v5929_v0 }
 0x3c7   : > { %10828 = vmatpush3.msra.mxu1 %v12242_v52  ;;  %10829 = vmatprep.mubr.msk.f32.mxu1 %vm11771_vm1, %v11770_v51 }
 0x3c8   : > { %10832 = vmatprep.subr.mxu1 %v11770_v51 }
 0x3cb   : > { %10795 = vmatmul.mubr.f32.vlgmr.msra.gmra.mrb[10].mxu0 %v5477_v62 }
 0x3cc   : > { %10798 = vmatpush3.msra.mxu0 %v12249_v58  ;;  %10799 = vmatprep.mubr.msk.f32.mxu0 %vm11771_vm1, %v11770_v51 }
 0x3cd   : > { %10802 = vmatprep.subr.mxu0 %v11770_v51 }
 0x3ce   : > { %10830 = vmatmul.mubr.f32.vlgmr.msra.gmra.mrb[12].mxu1 %v5930_v2 }
 0x3cf   : > { %10833 = vmatpush3.msra.mxu1 %v5941_v63  ;;  %10834 = vmatprep.mubr.msk.f32.mxu1 %vm11771_vm1, %v11770_v51 }
 0x3d0   : > { %v4445_v21 = vpop.xlane.xlu1 %4444  ;;  %10837 = vmatprep.subr.mxu1 %v11770_v51 }
 0x3d1   : > { %v4457_v22 = vsub.f32 %v12178_v10, %v4445_v21 }
 0x3d3   : > { %v4470_v23 = vmul.f32 1.442695, %v4457_v22  ;;  %10800 = vmatmul.mubr.f32.vlgmr.msra.gmra.mrb[10].mxu0 %v5478_v5  ;;  %v4479_v5 = vsel %vm813_vm2, %v12205_v29, 0.0 }
 0x3d4   : > { %10803 = vmatpush3.msra.mxu0 %v5489_v6  ;;  %10804 = vmatprep.mubr.msk.f32.mxu0 %vm11771_vm1, %v11770_v51  ;;  %v6761_v26 = vpop.permute.xlu1 %6760 }
 0x3d5   : > { %11691 = vpow2.f32 %v4470_v23  ;;  %v4442_v24 = vpop.xlane.xlu0 %4441  ;;  %10807 = vmatprep.subr.mxu0 %v11770_v51  ;;  %v12300_v27 = vand.u32 4294901760, %v6761_v26  ;;  %v4476_v23 = vsel %vm813_vm2, %v12176_v9, 0.0 }
 0x3d6   : > { %v4456_v25 = vsub.f32 %v12182_v15, %v4442_v24  ;;  %10835 = vmatmul.mubr.f32.vlgmr.msra.gmra.mrb[12].mxu1 %v12255_v61 }
 0x3d7   : > { %10838 = vmatpush3.msra.mxu1 %v12242_v52  ;;  %10839 = vmatprep.mubr.msk.f32.mxu1 %vm11771_vm1, %v11770_v51  ;;  %v6844_v15 = vsub.f32 %v6761_v26, %v12300_v27 }
 0x3d8   : > { %v4468_v10 = vmul.f32 1.442695, %v4456_v25  ;;  %10872 = vmatprep.subr.mxu1 %v11770_v51 }
 0x3d9   : > { %v6309_v28 = vpop.permute.xlu0 %6308  ;;  %v6845_v33 = vand.u32 4294901760, %v6844_v15 }
 0x3da   : > { %11693 = vpow2.f32 %v4468_v10  ;;  %v12309_v30 = vand.u32 4294901760, %v6309_v28 }
 0x3db   : > { %10805 = vmatmul.mubr.f32.vlgmr.msra.gmra.mrb[10].mxu0 %v12260_v4  ;;  %v6846_v43 = vsub.f32 %v6844_v15, %v6845_v33 }
 0x3dc   : > { %10808 = vmatpush3.msra.mxu0 %v12249_v58  ;;  %10809 = vmatprep.mubr.msk.f32.mxu0 %vm11771_vm1, %v11770_v51  ;;  %v6392_v34 = vsub.f32 %v6309_v28, %v12309_v30 }
 0x3dd   : > { %10842 = vmatprep.subr.mxu0 %v11770_v51  ;;  %v6847_v52 = vand.u32 4294901760, %v6846_v43 }
 0x3de   : > { %10840 = vmatmul.mubr.f32.vlgmr.msra.gmra.mrb[12].mxu1 %v12255_v61  ;;  %v6393_v45 = vand.u32 4294901760, %v6392_v34 }
 0x3df   : > { %v11692_v8 = vpop.eup %11691  ;;  %10873 = vmatpush3.msra.mxu1 %v12300_v27  ;;  %10874 = vmatprep.mubr.msk.f32.mxu1 %vm11771_vm1, %v11770_v51 }
 0x3e0   : > { %v6764_v31 = vsel %vm813_vm2, %v11692_v8, 0  ;;  %v4491_v32 = vsel %vm813_vm2, %v11692_v8, 0.0  ;;  %10877 = vmatprep.subr.mxu1 %v11770_v51  ;;  %v6394_v54 = vsub.f32 %v6392_v34, %v6393_v45 }
 0x3e1   : > { %v12317_v11 = vand.u32 4294901760, %v6764_v31  ;;  %4492 = vadd.xlane.f32.xlu0 %v4491_v32 }
 0x3e2   : > { %v6395_v58 = vand.u32 4294901760, %v6394_v54 }
 0x3e3   : > { %10810 = vmatmul.mubr.f32.vlgmr.msra.gmra.mrb[10].mxu0 %v12260_v4  ;;  %v6833_v35 = vsub.f32 %v6764_v31, %v12317_v11 }
 0x3e4   : > { %v11694_v36 = vpop.eup %11693  ;;  %10843 = vmatpush3.msra.mxu0 %v12309_v30  ;;  %10844 = vmatprep.mubr.msk.f32.mxu0 %vm11771_vm1, %v11770_v51 }
 0x3e5   : > { %v6312_v38 = vsel %vm813_vm2, %v11694_v36, 0  ;;  %v4488_v40 = vsel %vm813_vm2, %v11694_v36, 0.0  ;;  %v6834_v41 = vand.u32 4294901760, %v6833_v35  ;;  %10847 = vmatprep.subr.mxu0 %v11770_v51 }
 0x3e6   : > { %v6380_v44 = vand.u32 4294901760, %v6312_v38  ;;  %4489 = vadd.xlane.f32.xlu0 %v4488_v40 }
 0x3e7   : > { %v6835_v47 = vsub.f32 %v6833_v35, %v6834_v41 }
 0x3e8   : > { %v6381_v48 = vsub.f32 %v6312_v38, %v6380_v44 }
 0x3e9   : > { %v6836_v50 = vand.u32 4294901760, %v6835_v47 }
 0x3ea   : > { %v6382_v53 = vand.u32 4294901760, %v6381_v48 }
 0x3eb   : > { %10875 = vmatmul.mubr.f32.vlgmr.msra.gmra.mrb[14].mxu1 %v6836_v50 }
 0x3ec   : > { %10878 = vmatpush3.msra.mxu1 %v6847_v52  ;;  %v6383_v37 = vsub.f32 %v6381_v48, %v6382_v53  ;;  %10879 = vmatprep.mubr.msk.f32.mxu1 %vm11771_vm1, %v11770_v51 }
 0x3ed   : > { %10882 = vmatprep.subr.mxu1 %v11770_v51 }
 0x3ee   : > { %v6384_v56 = vand.u32 4294901760, %v6383_v37 }
 0x3f0   : > { %10845 = vmatmul.mubr.f32.vlgmr.msra.gmra.mrb[12].mxu0 %v6384_v56 }
 0x3f1   : > { %10848 = vmatpush3.msra.mxu0 %v6395_v58  ;;  %10849 = vmatprep.mubr.msk.f32.mxu0 %vm11771_vm1, %v11770_v51 }
 0x3f2   : > { %10852 = vmatprep.subr.mxu0 %v11770_v51 }
 0x3f3   : > { %10880 = vmatmul.mubr.f32.vlgmr.msra.gmra.mrb[14].mxu1 %v12317_v11 }
 0x3f4   : > { %10883 = vmatpush3.msra.mxu1 %v6844_v15  ;;  %10884 = vmatprep.mubr.msk.f32.mxu1 %vm11771_vm1, %v11770_v51 }
 0x3f5   : > { %10887 = vmatprep.subr.mxu1 %v11770_v51 }
 0x3f8   : > { %10850 = vmatmul.mubr.f32.vlgmr.msra.gmra.mrb[12].mxu0 %v6380_v44 }
 0x3f9   : > { %10853 = vmatpush3.msra.mxu0 %v6392_v34  ;;  %10854 = vmatprep.mubr.msk.f32.mxu0 %vm11771_vm1, %v11770_v51 }
 0x3fa   : > { %10857 = vmatprep.subr.mxu0 %v11770_v51 }
 0x3fb   : > { %10885 = vmatmul.mubr.f32.vlgmr.msra.gmra.mrb[14].mxu1 %v6833_v35 }
 0x3fc   : > { %10888 = vmatpush3.msra.mxu1 %v12300_v27  ;;  %10889 = vmatprep.mubr.msk.f32.mxu1 %vm11771_vm1, %v11770_v51 }
 0x3fd   : > { %10892 = vmatprep.subr.mxu1 %v11770_v51 }
 0x400   : > { %10855 = vmatmul.mubr.f32.vlgmr.msra.gmra.mrb[12].mxu0 %v6381_v48 }
 0x401   : > { %10858 = vmatpush3.msra.mxu0 %v12309_v30  ;;  %10859 = vmatprep.mubr.msk.f32.mxu0 %vm11771_vm1, %v11770_v51 }
 0x402   : > { %10862 = vmatprep.subr.mxu0 %v11770_v51 }
 0x403   : > { %10890 = vmatmul.mubr.f32.vlgmr.msra.gmra.mrb[14].mxu1 %v6834_v41 }
 0x404   : > { %10893 = vmatpush3.msra.mxu1 %v6845_v33  ;;  %10894 = vmatprep.mubr.msk.f32.mxu1 %vm11771_vm1, %v11770_v51 }
 0x405   : > { %10897 = vmatprep.subr.mxu1 %v11770_v51 }
 0x408   : > { %10860 = vmatmul.mubr.f32.vlgmr.msra.gmra.mrb[12].mxu0 %v6382_v53 }
 0x409   : > { %10863 = vmatpush3.msra.mxu0 %v6393_v45  ;;  %10864 = vmatprep.mubr.msk.f32.mxu0 %vm11771_vm1, %v11770_v51 }
 0x40a   : > { %10867 = vmatprep.subr.mxu0 %v11770_v51 }
 0x40b   : > { %10895 = vmatmul.mubr.f32.vlgmr.msra.gmra.mrb[14].mxu1 %v12317_v11 }
 0x40c   : > { %10898 = vmatpush3.msra.mxu1 %v12300_v27  ;;  %10899 = vmatprep.mubr.msk.f32.mxu1 %vm11771_vm1, %v11770_v51 }
 0x40d   : > { %10932 = vmatprep.subr.mxu1 %v11770_v51 }
 0x410   : > { %10865 = vmatmul.mubr.f32.vlgmr.msra.gmra.mrb[12].mxu0 %v6380_v44 }
 0x411   : > { %10868 = vmatpush3.msra.mxu0 %v12309_v30  ;;  %10869 = vmatprep.mubr.msk.f32.mxu0 %vm11771_vm1, %v11770_v51 }
 0x412   : > { %v4451_v59 = vpop.xlane.xlu1 %4450  ;;  %10902 = vmatprep.subr.mxu0 %v11770_v51 }
 0x413   : > { %v4459_v60 = vsub.f32 %v12223_v39, %v4451_v59  ;;  %10900 = vmatmul.mubr.f32.vlgmr.msra.gmra.mrb[14].mxu1 %v12317_v11 }
 0x414   : > { %10934 = vmatprep.mubr.msk.f32.mxu1 %vm11771_vm1, %v11770_v51 }
 0x415   : > { %v4474_v46 = vmul.f32 1.442695, %v4459_v60 }
 0x416   : > { %v7665_v61 = vpop.permute.xlu1 %7664 }
 0x417   : > { %11695 = vpow2.f32 %v4474_v46  ;;  %v12368_v63 = vand.u32 4294901760, %v7665_v61  ;;  %v4448_v57 = vpop.xlane.xlu0 %4447 }
 0x418   : > { %v4458_v0 = vsub.f32 %v12227_v42, %v4448_v57  ;;  %10870 = vmatmul.mubr.f32.vlgmr.msra.gmra.mrb[12].mxu0 %v6380_v44 }
 0x419   : > { %10933 = vmatpush3.msra.mxu1 %v12368_v63  ;;  %10904 = vmatprep.mubr.msk.f32.mxu0 %vm11771_vm1, %v11770_v51  ;;  %v7748_v2 = vsub.f32 %v7665_v61, %v12368_v63 }
 0x41a   : > { %v4472_v39 = vmul.f32 1.442695, %v4458_v0  ;;  %10937 = vmatprep.subr.mxu1 %v11770_v51 }
 0x41b   : > { %v7213_v1 = vpop.permute.xlu0 %7212  ;;  %v7749_v7 = vand.u32 4294901760, %v7748_v2 }
 0x41c   : > { %11697 = vpow2.f32 %v4472_v39  ;;  %v12375_v55 = vand.u32 4294901760, %v7213_v1 }
 0x41d   : > { %v7750_v18 = vsub.f32 %v7748_v2, %v7749_v7 }
 0x41e   : > { %10903 = vmatpush3.msra.mxu0 %v12375_v55  ;;  %v7296_v62 = vsub.f32 %v7213_v1, %v12375_v55 }
 0x41f   : > { %10907 = vmatprep.subr.mxu0 %v11770_v51  ;;  %v7751_v25 = vand.u32 4294901760, %v7750_v18 }
 0x420   : > { %v7297_v20 = vand.u32 4294901760, %v7296_v62 }
 0x421   : > { %v11696_v42 = vpop.eup %11695 }
 0x422   : > { %v7668_v3 = vsel %vm813_vm2, %v11696_v42, 0  ;;  %v4497_v4 = vsel %vm813_vm2, %v11696_v42, 0.0  ;;  %v7298_v29 = vsub.f32 %v7296_v62, %v7297_v20 }
 0x423   : > { %v12382_v6 = vand.u32 4294901760, %v7668_v3  ;;  %4498 = vadd.xlane.f32.xlu0 %v4497_v4 }
 0x424   : > { %v7299_v28 = vand.u32 4294901760, %v7298_v29 }
 0x425   : > { %v7737_v12 = vsub.f32 %v7668_v3, %v12382_v6 }
 0x426   : > { %v11698_v13 = vpop.eup %11697 }
 0x427   : > { %v7216_v14 = vsel %vm813_vm2, %v11698_v13, 0  ;;  %4480 = vadd.xlane.f32.xlu0 %v4479_v5  ;;  %v4494_v16 = vsel %vm813_vm2, %v11698_v13, 0.0  ;;  %v7738_v17 = vand.u32 4294901760, %v7737_v12  ;;  %v11726_v13 = vld [vmem:[%s11823_s22 + $0x20] sm:$0xff] }
 0x428   : > { %v7284_v19 = vand.u32 4294901760, %v7216_v14  ;;  %4495 = vadd.xlane.f32.xlu1 %v4494_v16 }
 0x429   : > { %v7739_v21 = vsub.f32 %v7737_v12, %v7738_v17 }
 0x42a   : > { %v7285_v22 = vsub.f32 %v7216_v14, %v7284_v19 }
 0x42b   : > { %v7740_v24 = vand.u32 4294901760, %v7739_v21 }
 0x42c   : > { %4477 = vadd.xlane.f32.xlu1 %v4476_v23  ;;  %v7286_v26 = vand.u32 4294901760, %v7285_v22 }
 0x42d   : > { %10935 = vmatmul.mubr.f32.vlgmr.msra.gmra.mrb[16].mxu1 %v7740_v24 }
 0x42e   : > { %10938 = vmatpush3.msra.mxu1 %v7751_v25  ;;  %v7287_v10 = vsub.f32 %v7285_v22, %v7286_v26  ;;  %10939 = vmatprep.mubr.msk.f32.mxu1 %vm11771_vm1, %v11770_v51 }
 0x42f   : > { %10942 = vmatprep.subr.mxu1 %v11770_v51 }
 0x430   : > { %v7288_v27 = vand.u32 4294901760, %v7287_v10 }
 0x432   : > { %10905 = vmatmul.mubr.f32.vlgmr.msra.gmra.mrb[14].mxu0 %v7288_v27 }
 0x433   : > { %10908 = vmatpush3.msra.mxu0 %v7299_v28  ;;  %10909 = vmatprep.mubr.msk.f32.mxu0 %vm11771_vm1, %v11770_v51 }
 0x434   : > { %10912 = vmatprep.subr.mxu0 %v11770_v51 }
 0x435   : > { %10940 = vmatmul.mubr.f32.vlgmr.msra.gmra.mrb[16].mxu1 %v12382_v6 }
 0x436   : > { %10943 = vmatpush3.msra.mxu1 %v7748_v2  ;;  %10944 = vmatprep.mubr.msk.f32.mxu1 %vm11771_vm1, %v11770_v51 }
 0x437   : > { %10947 = vmatprep.subr.mxu1 %v11770_v51 }
 0x43a   : > { %10910 = vmatmul.mubr.f32.vlgmr.msra.gmra.mrb[14].mxu0 %v7284_v19 }
 0x43b   : > { %10913 = vmatpush3.msra.mxu0 %v7296_v62  ;;  %10914 = vmatprep.mubr.msk.f32.mxu0 %vm11771_vm1, %v11770_v51  ;;  %v11724_v62 = vld [vmem:[%s11823_s22 + $0x30] sm:$0xff] }
 0x43c   : > { %10917 = vmatprep.subr.mxu0 %v11770_v51 }
 0x43d   : > { %10945 = vmatmul.mubr.f32.vlgmr.msra.gmra.mrb[16].mxu1 %v7737_v12  ;;  %v11725_v12 = vld [vmem:[%s11823_s22] sm:$0xff] }
 0x43e   : > { %10948 = vmatpush3.msra.mxu1 %v12368_v63  ;;  %10949 = vmatprep.mubr.msk.f32.mxu1 %vm11771_vm1, %v11770_v51 }
 0x43f   : > { %v4948_v9 = vpop.f32.mrb[8].mxu0  ;;  %10952 = vmatprep.subr.mxu1 %v11770_v51 }
 0x440   : > { %v10751_v15 = vpop.f32.mrb[9].mxu0 }
 0x442   : > { %10915 = vmatmul.mubr.f32.vlgmr.msra.gmra.mrb[14].mxu0 %v7285_v22 }
 0x443   : > { %10918 = vmatpush3.msra.mxu0 %v12375_v55  ;;  %10919 = vmatprep.mubr.msk.f32.mxu0 %vm11771_vm1, %v11770_v51 }
 0x444   : > { %10922 = vmatprep.subr.mxu0 %v11770_v51 }
 0x445   : > { %10950 = vmatmul.mubr.f32.vlgmr.msra.gmra.mrb[16].mxu1 %v7738_v17 }
 0x446   : > { %10953 = vmatpush3.msra.mxu1 %v7749_v7  ;;  %10954 = vmatprep.mubr.msk.f32.mxu1 %vm11771_vm1, %v11770_v51  ;;  %v11723_v7 = vld [vmem:[%s11823_s22 + $0x10] sm:$0xff] }
 0x447   : > { %10957 = vmatprep.subr.mxu1 %v11770_v51  ;;  %v4487_v32 = vpop.xlane.xlu1 %4486 }
 0x448   : > { %11699 = vrcp.f32 %v4487_v32 }
 0x44a   : > { %10920 = vmatmul.mubr.f32.vlgmr.msra.gmra.mrb[14].mxu0 %v7286_v26 }
 0x44b   : > { %10923 = vmatpush3.msra.mxu0 %v7297_v20  ;;  %10924 = vmatprep.mubr.msk.f32.mxu0 %vm11771_vm1, %v11770_v51 }
 0x44c   : > { %10927 = vmatprep.subr.mxu0 %v11770_v51  ;;  %v4484_v31 = vpop.xlane.xlu0 %4483 }
 0x44d   : > { %10955 = vmatmul.mubr.f32.vlgmr.msra.gmra.mrb[16].mxu1 %v12382_v6  ;;  %11701 = vrcp.f32 %v4484_v31 }
 0x44e   : > { %10958 = vmatpush3.msra.mxu1 %v12368_v63  ;;  %10959 = vmatprep.mubr.msk.f32.mxu1 %vm11771_vm1, %v11770_v51 }
 0x452   : > { %10925 = vmatmul.mubr.f32.vlgmr.msra.gmra.mrb[14].mxu0 %v7284_v19  ;;  %v11700_v35 = vpop.eup %11699 }
 0x453   : > { %10928 = vmatpush3.msra.mxu0 %v12375_v55  ;;  %10929 = vmatprep.mubr.msk.f32.mxu0 %vm11771_vm1, %v11770_v51 }
 0x455   : > { %10960 = vmatmul.mubr.f32.vlgmr.msra.gmra.mrb[16].mxu1 %v12382_v6 }
 0x457   : > { %v11702_v43 = vpop.eup %11701 }
 0x45a   : > { %10930 = vmatmul.mubr.f32.vlgmr.msra.gmra.mrb[14].mxu0 %v7284_v19 }
 0x46b   : > { %v5400_v8 = vpop.f32.mrb[10].mxu1 }
 0x46c   : > { %v10781_v30 = vpop.f32.mrb[11].mxu1 }
 0x46e   : > { %v4493_v11 = vpop.xlane.xlu0 %4492 }
 0x473   : > { %v4490_v33 = vpop.xlane.xlu0 %4489 }
 0x4b0   : > { %v4499_v34 = vpop.xlane.xlu0 %4498 }
 0x4b1   : > { %v6304_v36 = vpop.f32.mrb[12].mxu1 }
 0x4b2   : > { %v8127_v38 = vmul.f32 %v11700_v35, %v6304_v36  ;;  %v10841_v40 = vpop.f32.mrb[13].mxu1 }
 0x4b4   : > { %v4481_v41 = vpop.xlane.xlu0 %4480  ;;  %8138 = vrot.lane.b32.xlu0 %v8127_v38, %s11777_s12 }
 0x4b5   : > { %11703 = vrcp.f32 %v4481_v41  ;;  %v4496_v51 = vpop.xlane.xlu1 %4495 }
 0x4b6   : > { %v5852_v44 = vpop.f32.mrb[10].mxu0 }
 0x4b7   : > { %v8126_v45 = vmul.f32 %v11702_v43, %v5852_v44  ;;  %v10811_v47 = vpop.f32.mrb[11].mxu0 }
 0x4b9   : > { %8136 = vrot.lane.b32.xlu1 %v8126_v45, %s11777_s12  ;;  %v4478_v48 = vpop.xlane.xlu1 %4477 }
 0x4ba   : > { %11705 = vrcp.f32 %v4478_v48 }
 0x4bb   : > { %11707 = vrcp.f32 %v4493_v11 }
 0x4bc   : > { %11709 = vrcp.f32 %v4490_v33 }
 0x4bd   : > { %11711 = vrcp.f32 %v4499_v34 }
 0x4be   : > { %11713 = vrcp.f32 %v4496_v51 }
 0x4bf   : > { %v11704_v50 = vpop.eup %11703 }
 0x4c0   : > { %v8125_v52 = vmul.f32 %v11704_v50, %v5400_v8 }
 0x4c2   : > { %8133 = vst.msk [vmem:[#allocation3 + $0x8] sm:$0xff] %vm813_vm2, %v8125_v52 }
 0x4c4   : > { %v11706_v53 = vpop.eup %11705 }
 0x4c5   : > { %v8124_v54 = vmul.f32 %v11706_v53, %v4948_v9  ;;  %v11708_v37 = vpop.eup %11707 }
 0x4c6   : > { %v11710_v60 = vpop.eup %11709 }
 0x4c7   : > { %8132 = vst.msk [vmem:[#allocation3] sm:$0xff] %vm813_vm2, %v8124_v54  ;;  %v11712_v0 = vpop.eup %11711 }
 0x4c8   : > { %v11714_v42 = vpop.eup %11713 }
 0x4e6   : > { %v7208_v56 = vpop.f32.mrb[14].mxu1 }
 0x4e7   : > { %v8129_v58 = vmul.f32 %v11708_v37, %v7208_v56  ;;  %v10901_v59 = vpop.f32.mrb[15].mxu1 }
 0x4e9   : > { %8149 = vrot.lane.b32.xlu1 %v8129_v58, %s11778_s13 }
 0x4eb   : > { %v6756_v46 = vpop.f32.mrb[12].mxu0 }
 0x4ec   : > { %v8128_v61 = vmul.f32 %v11710_v60, %v6756_v46  ;;  %v10871_v63 = vpop.f32.mrb[13].mxu0 }
 0x4ee   : > { %8147 = vrot.lane.b32.xlu1 %v8128_v61, %s11778_s13 }
 0x526   : > { %v8139_v57 = vpop.permute.xlu0 %8138 }
 0x527   : > { %8144 = vst.msk [vmem:[#allocation3 + $0x8] sm:$0xff] %vm8142_vm3, %v8139_v57 }
 0x528   : > { %v8112_v39 = vpop.f32.mrb[16].mxu1 }
 0x529   : > { %v8131_v1 = vmul.f32 %v11712_v0, %v8112_v39  ;;  %v10961_v55 = vpop.f32.mrb[17].mxu1  ;;  %v8171_v0 = vsub.s32 1, %v11876_v49  ;;  %v12450_v39 = vld [vmem:[%s11833_s28] sm:$0xff] }
 0x52b   : > { %v8137_v2 = vpop.permute.xlu1 %8136  ;;  %8160 = vrot.lane.b32.xlu1 %v8131_v1, %s11779_s14  ;;  %v8172_v1 = vrot.slane %v12450_v39, %v8171_v0 }
 0x52c   : > { %8143 = vst.msk [vmem:[#allocation3] sm:$0xff] %vm8142_vm3, %v8137_v2 }
 0x52d   : > { %v7660_v3 = vpop.f32.mrb[14].mxu0 }
 0x52e   : > { %v8130_v4 = vmul.f32 %v11714_v42, %v7660_v3  ;;  %v10931_v6 = vpop.f32.mrb[15].mxu0 }
 0x52f   : > { %8179 = vrot.lane.b32.xlu1 %v11723_v7, %s11780_s17  ;;  %v11729_v7 = vld [vmem:[#allocation2] sm:$0xff] }
 0x530   : > { %8158 = vrot.lane.b32.xlu0 %v8130_v4, %s11779_s14  ;;  %v11728_v4 = vld [vmem:[#allocation2 + $0x8] sm:$0xff] }
 0x533   : > { %8183 = vrot.lane.b32.xlu1 %v11724_v62, %s11780_s17 }
 0x534   : > { %8177 = vrot.lane.b32.xlu0 %v11725_v12, %s11780_s17 }
 0x538   : > { %8181 = vrot.lane.b32.xlu0 %v11726_v13, %s11780_s17 }
 0x55b   : > { %v8150_v5 = vpop.permute.xlu1 %8149 }
 0x55c   : > { %8155 = vst.msk [vmem:[#allocation3 + $0x8] sm:$0xff] %vm8153_vm4, %v8150_v5 }
 0x560   : > { %v8148_v14 = vpop.permute.xlu1 %8147 }
 0x561   : > { %8154 = vst.msk [vmem:[#allocation3] sm:$0xff] %vm8153_vm4, %v8148_v14 }
 0x59d   : > { %v8161_v16 = vpop.permute.xlu1 %8160 }
 0x59e   : > { %8166 = vst.msk [vmem:[#allocation3 + $0x8] sm:$0xff] %vm8164_vm5, %v8161_v16 }
 0x5a1   : > { %v8180_v17 = vpop.permute.xlu1 %8179 }
 0x5a2   : > { %v8159_v18 = vpop.permute.xlu0 %8158  ;;  %v8199_v19 = vand.u32 4294901760, %v8180_v17 }
 0x5a3   : > { %8165 = vst.msk [vmem:[#allocation3] sm:$0xff] %vm8164_vm5, %v8159_v18 }
 0x5a4   : > { %v12435_v20 = vsub.f32 %v8180_v17, %v8199_v19 }
 0x5a5   : > { %v8184_v21 = vpop.permute.xlu1 %8183  ;;  %v8168_v22 = vld [vmem:[#allocation3 + $0x8] sm:$0xff] }
 0x5a6   : > { %v8178_v23 = vpop.permute.xlu0 %8177  ;;  %v8294_v24 = vand.u32 4294901760, %v12435_v20  ;;  %v8205_v25 = vand.u32 4294901760, %v8184_v21  ;;  %v8193_v26 = vsel %vm262_vm0, %v8168_v22, 0 }
 0x5a7   : > { %v8196_v29 = vand.u32 4294901760, %v8178_v23  ;;  %v12439_v10 = vand.u32 4294901760, %v8193_v26 }
 0x5a8   : > { %v8295_v27 = vsub.f32 %v12435_v20, %v8294_v24  ;;  %v8307_v28 = vsub.f32 %v8184_v21, %v8205_v25 }
 0x5a9   : > { %v8286_v9 = vsub.f32 %v8178_v23, %v8196_v29  ;;  %v11256_v15 = vpack.c.bf16 %v8199_v19, %v8196_v29  ;;  %v8275_v8 = vsub.f32 %v8193_v26, %v12439_v10  ;;  %v252_v26 = vld [vmem:[%s11823_s22 + $0x28] sm:$0xff] }
 0x5aa   : > { %v8182_v30 = vpop.permute.xlu0 %8181  ;;  %v8308_v31 = vand.u32 4294901760, %v8307_v28  ;;  %v8167_v32 = vld [vmem:[#allocation3] sm:$0xff]  ;;  %v8296_v36 = vand.u32 4294901760, %v8295_v27  ;;  %v254_v27 = vld [vmem:[%s11823_s22 + $0x38] sm:$0xff] }
 0x5ab   : > { %v8287_v11 = vand.u32 4294901760, %v8286_v9  ;;  %v8202_v33 = vand.u32 4294901760, %v8182_v30  ;;  %11257 = vmatprep.subr.bf16.mxu0 %v11256_v15  ;;  %v8190_v34 = vsel %vm262_vm0, %v8167_v32, 0  ;;  %v8276_v38 = vand.u32 4294901760, %v8275_v8 }
 0x5ac   : > { %11259 = vmatpush3.bf16.msra.mxu0 %v11256_v15  ;;  %v8264_v35 = vand.u32 4294901760, %v8190_v34  ;;  %v8309_v43 = vsub.f32 %v8307_v28, %v8308_v31  ;;  %v11272_v46 = vpack.c.bf16 %v12435_v20, %v8286_v9 }
 0x5ad   : > { %v8288_v40 = vsub.f32 %v8286_v9, %v8287_v11  ;;  %v8300_v41 = vsub.f32 %v8182_v30, %v8202_v33  ;;  %v11260_v51 = vpack.c.bf16 %v8205_v25, %v8202_v33  ;;  %v8277_v53 = vsub.f32 %v8275_v8, %v8276_v38  ;;  %v250_v25 = vld [vmem:[%s11823_s22 + $0x18] sm:$0xff] }
 0x5ae   : > { %v8265_v44 = vsub.f32 %v8190_v34, %v8264_v35  ;;  %v8310_v54 = vand.u32 4294901760, %v8309_v43  ;;  %v11288_v63 = vpack.c.bf16 %v8294_v24, %v8287_v11  ;;  %v248_v24 = vld [vmem:[%s11823_s22 + $0x8] sm:$0xff]  ;;  %v8784_v9 = vand.u32 4294901760, %v254_v27 }
 0x5af   : > { %v8301_v45 = vand.u32 4294901760, %v8300_v41  ;;  %11261 = vmatprep.subr.bf16.mxu0 %v11260_v51  ;;  %v8289_v47 = vand.u32 4294901760, %v8288_v40  ;;  %v8278_v59 = vand.u32 4294901760, %v8277_v53  ;;  %v11276_v61 = vpack.c.bf16 %v8307_v28, %v8300_v41 }
 0x5b0   : > { %11263 = vmatpush3.bf16.msra.mxu0 %v11260_v51  ;;  %v8266_v48 = vand.u32 4294901760, %v8265_v44  ;;  %v8775_v29 = vand.u32 4294901760, %v248_v24  ;;  %v8781_v28 = vand.u32 4294901760, %v252_v26 }
 0x5b1   : > { %v8302_v50 = vsub.f32 %v8300_v41, %v8301_v45  ;;  %v11264_v52 = vpack.c.bf16 %v8296_v36, %v8289_v47  ;;  %v11292_v57 = vpack.c.bf16 %v8308_v31, %v8301_v45  ;;  %v8886_v36 = vsub.f32 %v254_v27, %v8784_v9  ;;  %v9306_v27 = vld [vmem:[%s11828_s25 + $0x10] sm:$0xff] }
 0x5b2   : > { %v8267_v37 = vsub.f32 %v8265_v44, %v8266_v48  ;;  %v8865_v30 = vsub.f32 %v248_v24, %v8775_v29 }
 0x5b3   : > { %11265 = vmatprep.subr.bf16.mxu0 %v11264_v52  ;;  %v8303_v56 = vand.u32 4294901760, %v8302_v50 }
 0x5b4   : > { %v8268_v58 = vand.u32 4294901760, %v8267_v37  ;;  %v8866_v32 = vand.u32 4294901760, %v8865_v30 }
 0x5b5   : > { %v11268_v60 = vpack.c.bf16 %v8310_v54, %v8303_v56  ;;  %v12478_v56 = vld [vmem:[%s11828_s25] sm:$0xff] }
 0x5b6   : > { %10970 = vmatprep.mubr.f32.mxu0 %v8268_v58  ;;  %v8867_v33 = vsub.f32 %v8865_v30, %v8866_v32  ;;  %v12481_v58 = vld [vmem:[%s11828_s25 + $0x8] sm:$0xff] }
 0x5b7   : > { %10971 = vmatmul.mubr.f32.vlgmr.msra.gmra.mrb[16].mxu0 %v8278_v59  ;;  %v9324_v59 = vand.u32 4294901760, %v12478_v56 }
 0x5b8   : > { %11267 = vmatpush3.bf16.msra.mxu0 %v11264_v52  ;;  %10981 = vmatprep.mubr.f32.mxu0 %v8264_v35 }
 0x5b9   : > { %11269 = vmatprep.subr.bf16.mxu0 %v11268_v60 }
 0x5bc   : > { %11271 = vmatpush3.bf16.msra.mxu0 %v11268_v60  ;;  %v9327_v60 = vand.u32 4294901760, %v12481_v58 }
 0x5bd   : > { %11273 = vmatprep.subr.bf16.mxu0 %v11272_v46 }
 0x5bf   : > { %10982 = vmatmul.mubr.f32.vlgmr.msra.gmra.mrb[16].mxu0 %v12439_v10 }
 0x5c0   : > { %11275 = vmatpush3.bf16.msra.mxu0 %v11272_v46  ;;  %10992 = vmatprep.mubr.f32.mxu0 %v8265_v44  ;;  %v12489_v46 = vpack.c.bf16 %v9327_v60, %v9324_v59 }
 0x5c1   : > { %11277 = vmatprep.subr.bf16.mxu0 %v11276_v61 }
 0x5c4   : > { %11279 = vmatpush3.bf16.msra.mxu0 %v11276_v61 }
 0x5c5   : > { %11281 = vmatprep.subr.bf16.mxu0 %v11256_v15 }
 0x5c7   : > { %10993 = vmatmul.mubr.f32.vlgmr.msra.gmra.mrb[16].mxu0 %v8275_v8  ;;  %v12471_v8 = vpack.c.bf16 %v8784_v9, %v8781_v28  ;;  %v9330_v9 = vand.u32 4294901760, %v9306_v27 }
 0x5c8   : > { %11283 = vmatpush3.bf16.msra.mxu0 %v11256_v15  ;;  %11003 = vmatprep.mubr.f32.mxu0 %v8266_v48 }
 0x5c9   : > { %11285 = vmatprep.subr.bf16.mxu0 %v11260_v51 }
 0x5cc   : > { %11287 = vmatpush3.bf16.msra.mxu0 %v11260_v51 }
 0x5cd   : > { %11289 = vmatprep.subr.bf16.mxu0 %v11288_v63 }
 0x5cf   : > { %11004 = vmatmul.mubr.f32.vlgmr.msra.gmra.mrb[16].mxu0 %v8276_v38  ;;  %v8868_v38 = vand.u32 4294901760, %v8867_v33 }
 0x5d0   : > { %11291 = vmatpush3.bf16.msra.mxu0 %v11288_v63  ;;  %11014 = vmatprep.mubr.f32.mxu0 %v8264_v35 }
 0x5d1   : > { %11293 = vmatprep.subr.bf16.mxu0 %v11292_v57 }
 0x5d4   : > { %11295 = vmatpush3.bf16.msra.mxu0 %v11292_v57 }
 0x5d5   : > { %11297 = vmatprep.subr.bf16.mxu0 %v11256_v15 }
 0x5d7   : > { %11015 = vmatmul.mubr.f32.vlgmr.msra.gmra.mrb[16].mxu0 %v12439_v10 }
 0x5d8   : > { %11299 = vmatpush3.bf16.msra.mxu0 %v11256_v15  ;;  %11025 = vmatprep.mubr.f32.mxu0 %v8264_v35  ;;  %v8879_v35 = vsub.f32 %v252_v26, %v8781_v28  ;;  %v9307_v28 = vld [vmem:[%s11828_s25 + $0x18] sm:$0xff] }
 0x5d9   : > { %11301 = vmatprep.subr.bf16.mxu0 %v11260_v51 }
 0x5da   : > { %v8880_v41 = vand.u32 4294901760, %v8879_v35  ;;  %v11324_v53 = vpack.c.bf16 %v8886_v36, %v8879_v35 }
 0x5dc   : > { %11303 = vmatpush3.bf16.msra.mxu0 %v11260_v51  ;;  %v8887_v51 = vand.u32 4294901760, %v8886_v36  ;;  %v8881_v44 = vsub.f32 %v8879_v35, %v8880_v41  ;;  %v9311_v35 = vld [vmem:[%s11828_s25 + $0x38] sm:$0xff] }
 0x5dd   : > { %11401 = vmatprep.subr.bf16.mxu0 %v12489_v46 }
 0x5de   : > { %v8888_v45 = vsub.f32 %v8886_v36, %v8887_v51  ;;  %v8882_v47 = vand.u32 4294901760, %v8881_v44  ;;  %v11340_v37 = vpack.c.bf16 %v8887_v51, %v8880_v41  ;;  %v9418_v41 = vsub.f32 %v12478_v56, %v9324_v59 }
 0x5df   : > { %11026 = vmatmul.mubr.f32.vlgmr.msra.gmra.mrb[16].mxu0 %v12439_v10  ;;  %v8778_v10 = vand.u32 4294901760, %v250_v25  ;;  %v9425_v51 = vsub.f32 %v12481_v58, %v9327_v60 }
 0x5e0   : > { %v8889_v48 = vand.u32 4294901760, %v8888_v45  ;;  %11403 = vmatpush3.bf16.msra.mxu0 %v12489_v46 }
 0x5e1   : > { %v12469_v15 = vpack.c.bf16 %v8778_v10, %v8775_v29  ;;  %v8872_v31 = vsub.f32 %v250_v25, %v8778_v10  ;;  %v9426_v44 = vand.u32 4294901760, %v9425_v51 }
 0x5e2   : > { %v11316_v50 = vpack.c.bf16 %v8889_v48, %v8882_v47 }
 0x5e3   : > { %11305 = vmatprep.subr.bf16.mxu1 %v12469_v15  ;;  %v8873_v11 = vand.u32 4294901760, %v8872_v31  ;;  %v11320_v52 = vpack.c.bf16 %v8872_v31, %v8865_v30  ;;  %v9333_v30 = vand.u32 4294901760, %v9307_v28  ;;  %v9427_v48 = vsub.f32 %v9425_v51, %v9426_v44 }
 0x5e4   : > { %11307 = vmatpush3.bf16.msra.mxu1 %v12469_v15 }
 0x5e5   : > { %11309 = vmatprep.subr.bf16.mxu1 %v12471_v8  ;;  %v8874_v34 = vsub.f32 %v8872_v31, %v8873_v11  ;;  %v11336_v54 = vpack.c.bf16 %v8873_v11, %v8866_v32  ;;  %v12519_v31 = vpack.c.bf16 %v9333_v30, %v9330_v9  ;;  %v9308_v32 = vld [vmem:[%s11828_s25 + $0x20] sm:$0xff] }
 0x5e7   : > { %v8875_v40 = vand.u32 4294901760, %v8874_v34  ;;  %11405 = vmatprep.subr.bf16.mxu0 %v12519_v31  ;;  %v9310_v34 = vld [vmem:[%s11828_s25 + $0x30] sm:$0xff] }
 0x5e8   : > { %11311 = vmatpush3.bf16.msra.mxu1 %v12471_v8  ;;  %11407 = vmatpush3.bf16.msra.mxu0 %v12519_v31  ;;  %v9342_v36 = vand.u32 4294901760, %v9310_v34 }
 0x5e9   : > { %v11312_v43 = vpack.c.bf16 %v8875_v40, %v8868_v38  ;;  %v9345_v38 = vand.u32 4294901760, %v9311_v35 }
 0x5eb   : > { %11313 = vmatprep.subr.bf16.mxu1 %v11312_v43  ;;  %v12535_v40 = vpack.c.bf16 %v9345_v38, %v9342_v36 }
 0x6b2   : > { %v11027_v55 = vpop.f32.mrb[16].mxu0 }
 0x6b3   : > { %v11450_v2 = vadd.f32 %v11027_v55, %v8172_v1  ;;  %v8713_v42 = vpop.f32.mrb[17].mxu0 }
 0x6b4   : > { %v11451_v3 = vadd.f32 %v8713_v42, %v8172_v1  ;;  %v8760_v42 = vsub.s32 3, %v11876_v49 }
 0x6b5   : > { %v8724_v6 = vadd.f32 %v11728_v4, %v11450_v2  ;;  %v8754_v2 = vsub.s32 2, %v11876_v49 }
 0x6b6   : > { %v8723_v62 = vadd.f32 %v11729_v7, %v11451_v3  ;;  %v8761_v7 = vrot.slane %v12450_v39, %v8760_v42 }
 0x6b7   : > { %v8728_v12 = vsel %vm262_vm0, %v8724_v6, 0.0  ;;  %v8755_v3 = vrot.slane %v12450_v39, %v8754_v2 }
 0x6b8   : > { %8729 = vadd.xlane.f32.xlu1 %v8728_v12  ;;  %v8725_v13 = vsel %vm262_vm0, %v8723_v62, 0.0 }
 0x6b9   : > { %8726 = vadd.xlane.f32.xlu0 %v8725_v13 }
 0x745   : > { %v8730_v5 = vpop.xlane.xlu1 %8729 }
 0x746   : > { %v8733_v14 = vmul.f32 0.03125, %v8730_v5  ;;  %v8727_v16 = vpop.xlane.xlu0 %8726 }
 0x747   : > { %v8732_v17 = vmul.f32 0.03125, %v8727_v16 }
 0x748   : > { %v12455_v18 = vsub.f32 %v8724_v6, %v8733_v14 }
 0x749   : > { %v12457_v19 = vsub.f32 %v8723_v62, %v8732_v17 }
 0x74a   : > { %v8737_v22 = vmul.f32 %v12455_v18, %v12455_v18 }
 0x74b   : > { %v8736_v20 = vmul.f32 %v12457_v19, %v12457_v19 }
 0x74c   : > { %v8741_v23 = vsel %vm262_vm0, %v8737_v22, 0.0 }
 0x74d   : > { %v8738_v21 = vsel %vm262_vm0, %v8736_v20, 0.0 }
 0x74e   : > { %8739 = vadd.xlane.f32.xlu0 %v8738_v21 }
 0x752   : > { %8742 = vadd.xlane.f32.xlu0 %v8741_v23 }
 0x7db   : > { %v8740_v61 = vpop.xlane.xlu0 %8739 }
 0x7dc   : > { %v8744_v63 = vmul.f32 0.03125, %v8740_v61 }
 0x7de   : > { %v8746_v57 = vadd.f32 1e-05, %v8744_v63 }
 0x7df   : > { %v8743_v0 = vpop.xlane.xlu0 %8742 }
 0x7e0   : > { %11715 = vrsqrt.f32 %v8746_v57  ;;  %v8745_v1 = vmul.f32 0.03125, %v8743_v0 }
 0x7e2   : > { %v8747_v55 = vadd.f32 1e-05, %v8745_v1 }
 0x7e4   : > { %11717 = vrsqrt.f32 %v8747_v55 }
 0x7ea   : > { %v11716_v4 = vpop.eup %11715 }
 0x7eb   : > { %v8750_v6 = vmul.f32 %v11716_v4, %v12457_v19 }
 0x7ed   : > { %v8756_v62 = vmul.f32 %v8755_v3, %v8750_v6  ;;  %v9460_v6 = vsub.f32 %v9310_v34, %v9342_v36 }
 0x7ee   : > { %v11718_v12 = vpop.eup %11717 }
 0x7ef   : > { %v8751_v13 = vmul.f32 %v11718_v12, %v12455_v18  ;;  %v12499_v5 = vadd.f32 %v8761_v7, %v8756_v62  ;;  %v9467_v62 = vsub.f32 %v9311_v35, %v9345_v38 }
 0x7f1   : > { %v8757_v14 = vmul.f32 %v8755_v3, %v8751_v13  ;;  %v8769_v16 = vsel %vm262_vm0, %v12499_v5, 0 }
 0x7f2   : > { %v8843_v17 = vand.u32 4294901760, %v8769_v16 }
 0x7f3   : > { %v12503_v20 = vadd.f32 %v8761_v7, %v8757_v14  ;;  %v9461_v14 = vand.u32 4294901760, %v9460_v6 }
 0x7f4   : > { %v8844_v21 = vsub.f32 %v8769_v16, %v8843_v17  ;;  %v9468_v16 = vand.u32 4294901760, %v9467_v62 }
 0x7f5   : > { %v8772_v22 = vsel %vm262_vm0, %v12503_v20, 0 }
 0x7f6   : > { %v8845_v19 = vand.u32 4294901760, %v8844_v21  ;;  %v8853_v23 = vand.u32 4294901760, %v8772_v22 }
 0x7f8   : > { %v8846_v24 = vsub.f32 %v8844_v21, %v8845_v19  ;;  %v8854_v25 = vsub.f32 %v8772_v22, %v8853_v23  ;;  %v11428_v22 = vpack.c.bf16 %v9468_v16, %v9461_v14 }
 0x7fa   : > { %v8847_v26 = vand.u32 4294901760, %v8846_v24  ;;  %v8855_v29 = vand.u32 4294901760, %v8854_v25 }
 0x7fc   : > { %11036 = vmatprep.mubr.f32.mxu1 %v8847_v26  ;;  %v8856_v18 = vsub.f32 %v8854_v25, %v8855_v29  ;;  %v11384_v26 = vpack.c.bf16 %v9425_v51, %v9418_v41 }
 0x7fe   : > { %v8857_v10 = vand.u32 4294901760, %v8856_v18 }
 0x800   : > { %11037 = vmatmul.mubr.f32.vlgmr.msra.gmra.mrb[18].mxu1 %v8857_v10  ;;  %v11396_v10 = vpack.c.bf16 %v9467_v62, %v9460_v6 }
 0x801   : > { %11315 = vmatpush3.bf16.msra.mxu1 %v11312_v43  ;;  %11047 = vmatprep.mubr.f32.mxu1 %v8843_v17  ;;  %v9419_v43 = vand.u32 4294901760, %v9418_v41 }
 0x802   : > { %11317 = vmatprep.subr.bf16.mxu1 %v11316_v50 }
 0x803   : > { %v11416_v45 = vpack.c.bf16 %v9426_v44, %v9419_v43  ;;  %v9420_v47 = vsub.f32 %v9418_v41, %v9419_v43 }
 0x805   : > { %11319 = vmatpush3.bf16.msra.mxu1 %v11316_v50  ;;  %v9432_v50 = vsub.f32 %v9306_v27, %v9330_v9  ;;  %v8766_v27 = vsub.s32 4, %v11876_v49 }
 0x806   : > { %11321 = vmatprep.subr.bf16.mxu1 %v11320_v52 }
 0x808   : > { %11048 = vmatmul.mubr.f32.vlgmr.msra.gmra.mrb[18].mxu1 %v8853_v23 }
 0x809   : > { %11323 = vmatpush3.bf16.msra.mxu1 %v11320_v52  ;;  %11058 = vmatprep.mubr.f32.mxu1 %v8844_v21  ;;  %v9439_v52 = vsub.f32 %v9307_v28, %v9333_v30  ;;  %v9462_v21 = vsub.f32 %v9460_v6, %v9461_v14  ;;  %v8767_v28 = vrot.slane %v12450_v39, %v8766_v27 }
 0x80a   : > { %11325 = vmatprep.subr.bf16.mxu1 %v11324_v53 }
 0x80b   : > { %v9440_v56 = vand.u32 4294901760, %v9439_v52 }
 0x80d   : > { %11327 = vmatpush3.bf16.msra.mxu1 %v11324_v53  ;;  %v9421_v53 = vand.u32 4294901760, %v9420_v47  ;;  %v9441_v57 = vsub.f32 %v9439_v52, %v9440_v56 }
 0x80e   : > { %11329 = vmatprep.subr.bf16.mxu1 %v12469_v15 }
 0x80f   : > { %v9442_v2 = vand.u32 4294901760, %v9441_v57 }
 0x810   : > { %11059 = vmatmul.mubr.f32.vlgmr.msra.gmra.mrb[18].mxu1 %v8854_v25 }
 0x811   : > { %11331 = vmatpush3.bf16.msra.mxu1 %v12469_v15  ;;  %11069 = vmatprep.mubr.f32.mxu1 %v8845_v19  ;;  %v9469_v19 = vsub.f32 %v9467_v62, %v9468_v16  ;;  %v9933_v16 = vsub.s32 6, %v11876_v49 }
 0x812   : > { %11333 = vmatprep.subr.bf16.mxu1 %v12471_v8 }
 0x813   : > { %v9470_v24 = vand.u32 4294901760, %v9469_v19 }
 0x815   : > { %11335 = vmatpush3.bf16.msra.mxu1 %v12471_v8 }
 0x816   : > { %11337 = vmatprep.subr.bf16.mxu1 %v11336_v54 }
 0x818   : > { %11070 = vmatmul.mubr.f32.vlgmr.msra.gmra.mrb[18].mxu1 %v8855_v29  ;;  %v11388_v29 = vpack.c.bf16 %v9439_v52, %v9432_v50 }
 0x819   : > { %11339 = vmatpush3.bf16.msra.mxu1 %v11336_v54  ;;  %11080 = vmatprep.mubr.f32.mxu1 %v8843_v17  ;;  %v9428_v54 = vand.u32 4294901760, %v9427_v48 }
 0x81a   : > { %11341 = vmatprep.subr.bf16.mxu1 %v11340_v37 }
 0x81b   : > { %v11368_v58 = vpack.c.bf16 %v9428_v54, %v9421_v53 }
 0x81d   : > { %11343 = vmatpush3.bf16.msra.mxu1 %v11340_v37  ;;  %v9433_v37 = vand.u32 4294901760, %v9432_v50 }
 0x81e   : > { %11345 = vmatprep.subr.bf16.mxu1 %v12469_v15 }
 0x81f   : > { %v9434_v59 = vsub.f32 %v9432_v50, %v9433_v37  ;;  %v11420_v63 = vpack.c.bf16 %v9440_v56, %v9433_v37 }
 0x820   : > { %11081 = vmatmul.mubr.f32.vlgmr.msra.gmra.mrb[18].mxu1 %v8853_v23 }
 0x821   : > { %11347 = vmatpush3.bf16.msra.mxu1 %v12469_v15  ;;  %11091 = vmatprep.mubr.f32.mxu1 %v8843_v17  ;;  %v9309_v15 = vld [vmem:[%s11828_s25 + $0x28] sm:$0xff]  ;;  %v9435_v0 = vand.u32 4294901760, %v9434_v59 }
 0x822   : > { %11349 = vmatprep.subr.bf16.mxu1 %v12471_v8  ;;  %v9339_v11 = vand.u32 4294901760, %v9309_v15 }
 0x823   : > { %v11372_v7 = vpack.c.bf16 %v9442_v2, %v9435_v0 }
 0x824   : > { %v9453_v61 = vsub.f32 %v9309_v15, %v9339_v11 }
 0x825   : > { %11351 = vmatpush3.bf16.msra.mxu1 %v12471_v8  ;;  %v9336_v8 = vand.u32 4294901760, %v9308_v32 }
 0x826   : > { %11353 = vmatprep.subr.bf16.mxu1 %v12489_v46  ;;  %v9454_v55 = vand.u32 4294901760, %v9453_v61 }
 0x827   : > { %v12527_v33 = vpack.c.bf16 %v9339_v11, %v9336_v8  ;;  %v9446_v60 = vsub.f32 %v9308_v32, %v9336_v8 }
 0x828   : > { %11092 = vmatmul.mubr.f32.vlgmr.msra.gmra.mrb[18].mxu1 %v8853_v23  ;;  %v9455_v4 = vsub.f32 %v9453_v61, %v9454_v55  ;;  %v9463_v23 = vand.u32 4294901760, %v9462_v21  ;;  %v9934_v21 = vrot.slane %v12450_v39, %v9933_v16 }
 0x829   : > { %11355 = vmatpush3.bf16.msra.mxu1 %v12489_v46  ;;  %11409 = vmatprep.subr.bf16.mxu0 %v12527_v33  ;;  %v9447_v1 = vand.u32 4294901760, %v9446_v60  ;;  %v11392_v18 = vpack.c.bf16 %v9453_v61, %v9446_v60 }
 0x82a   : > { %11357 = vmatprep.subr.bf16.mxu1 %v12519_v31  ;;  %11411 = vmatpush3.bf16.msra.mxu0 %v12527_v33  ;;  %v9456_v13 = vand.u32 4294901760, %v9455_v4  ;;  %v11380_v25 = vpack.c.bf16 %v9470_v24, %v9463_v23 }
 0x82b   : > { %11413 = vmatprep.subr.bf16.mxu0 %v12535_v40  ;;  %v11424_v42 = vpack.c.bf16 %v9454_v55, %v9447_v1  ;;  %v9448_v3 = vsub.f32 %v9446_v60, %v9447_v1 }
 0x82d   : > { %11359 = vmatpush3.bf16.msra.mxu1 %v12519_v31  ;;  %v9449_v12 = vand.u32 4294901760, %v9448_v3 }
 0x82e   : > { %11361 = vmatprep.subr.bf16.mxu1 %v12527_v33  ;;  %11415 = vmatpush3.bf16.msra.mxu0 %v12535_v40 }
 0x82f   : > { %11417 = vmatprep.subr.bf16.mxu0 %v11416_v45  ;;  %v11376_v17 = vpack.c.bf16 %v9456_v13, %v9449_v12 }
 0x831   : > { %11363 = vmatpush3.bf16.msra.mxu1 %v12527_v33 }
 0x832   : > { %11365 = vmatprep.subr.bf16.mxu1 %v12535_v40 }
 0x835   : > { %11367 = vmatpush3.bf16.msra.mxu1 %v12535_v40 }
 0x836   : > { %11369 = vmatprep.subr.bf16.mxu1 %v11368_v58 }
 0x8fb   : > { %v11093_v9 = vpop.f32.mrb[18].mxu1 }
 0x8fc   : > { %v11452_v30 = vadd.f32 %v11093_v9, %v8767_v28  ;;  %v9292_v32 = vpop.f32.mrb[19].mxu1 }
 0x8fd   : > { %v11453_v15 = vadd.f32 %v9292_v32, %v8767_v28 }
 0x8fe   : > { %v9303_v8 = vmax.f32 %v11452_v30, 0.0 }
 0x8ff   : > { %v9302_v11 = vmax.f32 %v11453_v15, 0.0 }
 0x900   : > { %v9321_v34 = vsel %vm9316_vm6, %v9303_v8, 0 }
 0x901   : > { %v9406_v35 = vand.u32 4294901760, %v9321_v34  ;;  %v9318_v36 = vsel %vm9316_vm6, %v9302_v11, 0 }
 0x902   : > { %v9396_v38 = vand.u32 4294901760, %v9318_v36 }
 0x903   : > { %v9407_v43 = vsub.f32 %v9321_v34, %v9406_v35 }
 0x904   : > { %v9397_v41 = vsub.f32 %v9318_v36, %v9396_v38 }
 0x905   : > { %v9408_v51 = vand.u32 4294901760, %v9407_v43 }
 0x906   : > { %v9398_v44 = vand.u32 4294901760, %v9397_v41 }
 0x907   : > { %v9409_v47 = vsub.f32 %v9407_v43, %v9408_v51 }
 0x908   : > { %11167 = vmatprep.mubr.f32.mxu0 %v9398_v44  ;;  %v9399_v48 = vsub.f32 %v9397_v41, %v9398_v44 }
 0x909   : > { %11168 = vmatmul.mubr.f32.vlgmr.msra.gmra.mrb[18].mxu0 %v9408_v51  ;;  %v9410_v52 = vand.u32 4294901760, %v9409_v47 }
 0x90a   : > { %11419 = vmatpush3.bf16.msra.mxu0 %v11416_v45  ;;  %11186 = vmatprep.mubr.f32.mxu0 %v9396_v38  ;;  %v9400_v50 = vand.u32 4294901760, %v9399_v48 }
 0x90b   : > { %11421 = vmatprep.subr.bf16.mxu0 %v11420_v63 }
 0x90c   : > { %11110 = vmatprep.mubr.f32.mxu1 %v9400_v50 }
 0x90d   : > { %11111 = vmatmul.mubr.f32.vlgmr.msra.gmra.mrb[20].mxu1 %v9410_v52 }
 0x90e   : > { %11371 = vmatpush3.bf16.msra.mxu1 %v11368_v58  ;;  %11423 = vmatpush3.bf16.msra.mxu0 %v11420_v63 }
 0x90f   : > { %11129 = vmatprep.mubr.f32.mxu1 %v9396_v38  ;;  %11373 = vmatprep.subr.bf16.mxu1 %v11372_v7 }
 0x910   : > { %11425 = vmatprep.subr.bf16.mxu0 %v11424_v42 }
 0x912   : > { %11375 = vmatpush3.bf16.msra.mxu1 %v11372_v7  ;;  %11427 = vmatpush3.bf16.msra.mxu0 %v11424_v42 }
 0x913   : > { %11377 = vmatprep.subr.bf16.mxu1 %v11376_v17  ;;  %11429 = vmatprep.subr.bf16.mxu0 %v11428_v22 }
 0x916   : > { %11379 = vmatpush3.bf16.msra.mxu1 %v11376_v17  ;;  %11431 = vmatpush3.bf16.msra.mxu0 %v11428_v22  ;;  %v9939_v17 = vsub.s32 7, %v11876_v49 }
 0x917   : > { %11381 = vmatprep.subr.bf16.mxu1 %v11380_v25  ;;  %11433 = vmatprep.subr.bf16.mxu0 %v12489_v46 }
 0x918   : > { %v9940_v23 = vrot.slane %v12450_v39, %v9939_v17 }
 0x919   : > { %11187 = vmatmul.mubr.f32.vlgmr.msra.gmra.mrb[18].mxu0 %v9406_v35 }
 0x91a   : > { %11383 = vmatpush3.bf16.msra.mxu1 %v11380_v25  ;;  %11435 = vmatpush3.bf16.msra.mxu0 %v12489_v46  ;;  %v9314_v46 = vsub.s32 5, %v11876_v49 }
 0x91b   : > { %11205 = vmatprep.mubr.f32.mxu0 %v9396_v38  ;;  %11385 = vmatprep.subr.bf16.mxu1 %v11384_v26 }
 0x91c   : > { %11437 = vmatprep.subr.bf16.mxu0 %v12519_v31 }
 0x91d   : > { %11130 = vmatmul.mubr.f32.vlgmr.msra.gmra.mrb[20].mxu1 %v9406_v35 }
 0x91e   : > { %11387 = vmatpush3.bf16.msra.mxu1 %v11384_v26  ;;  %11148 = vmatprep.mubr.f32.mxu1 %v9397_v41 }
 0x91f   : > { %11439 = vmatpush3.bf16.msra.mxu0 %v12519_v31  ;;  %11389 = vmatprep.subr.bf16.mxu1 %v11388_v29  ;;  %v9315_v31 = vrot.slane %v12450_v39, %v9314_v46 }
 0x920   : > { %11441 = vmatprep.subr.bf16.mxu0 %v12527_v33 }
 0x922   : > { %11391 = vmatpush3.bf16.msra.mxu1 %v11388_v29 }
 0x923   : > { %11443 = vmatpush3.bf16.msra.mxu0 %v12527_v33  ;;  %11393 = vmatprep.subr.bf16.mxu1 %v11392_v18 }
 0x924   : > { %11445 = vmatprep.subr.bf16.mxu0 %v12535_v40 }
 0x926   : > { %11395 = vmatpush3.bf16.msra.mxu1 %v11392_v18 }
 0x927   : > { %11447 = vmatpush3.bf16.msra.mxu0 %v12535_v40  ;;  %11397 = vmatprep.subr.bf16.mxu1 %v11396_v10 }
 0x92a   : > { %11206 = vmatmul.mubr.f32.vlgmr.msra.gmra.mrb[18].mxu0 %v9406_v35  ;;  %11399 = vmatpush3.bf16.msra.mxu1 %v11396_v10 }
 0x92d   : > { %11149 = vmatmul.mubr.f32.vlgmr.msra.gmra.mrb[20].mxu1 %v9407_v43 }
 0x9fd   : > { %v11207_v45 = vpop.f32.mrb[18].mxu0 }
 0x9fe   : > { %v9893_v53 = vpop.f32.mrb[19].mxu0 }
 0xa00   : > { %v11150_v54 = vpop.f32.mrb[20].mxu1 }
 0xa01   : > { %v11454_v37 = vadd.f32 %v11150_v54, %v9315_v31  ;;  %v9617_v56 = vpop.f32.mrb[21].mxu1 }
 0xa02   : > { %v11456_v33 = vadd.f32 %v9617_v56, %v9315_v31 }
 0xa03   : > { %v11455_v58 = vadd.f32 %v11454_v37, %v11207_v45 }
 0xa04   : > { %v11457_v59 = vadd.f32 %v11456_v33, %v9893_v53 }
 0xa05   : > { %v9904_v60 = vadd.f32 %v11455_v58, %v12503_v20 }
 0xa06   : > { %v9903_v40 = vadd.f32 %v11457_v59, %v12499_v5 }
 0xa07   : > { %v9908_v61 = vsel %vm262_vm0, %v9904_v60, 0.0 }
 0xa08   : > { %9909 = vadd.xlane.f32.xlu0 %v9908_v61  ;;  %v9905_v63 = vsel %vm262_vm0, %v9903_v40, 0.0 }
 0xa09   : > { %9906 = vadd.xlane.f32.xlu1 %v9905_v63 }
 0xa95   : > { %v9910_v57 = vpop.xlane.xlu0 %9909 }
 0xa96   : > { %v9912_v0 = vmul.f32 0.03125, %v9910_v57  ;;  %v9907_v1 = vpop.xlane.xlu1 %9906 }
 0xa97   : > { %v9911_v55 = vmul.f32 0.03125, %v9907_v1 }
 0xa98   : > { %v9914_v2 = vsub.f32 %v9904_v60, %v9912_v0 }
 0xa99   : > { %v9913_v42 = vsub.f32 %v9903_v40, %v9911_v55 }
 0xa9a   : > { %v9916_v3 = vmul.f32 %v9914_v2, %v9914_v2 }
 0xa9b   : > { %v9915_v4 = vmul.f32 %v9913_v42, %v9913_v42 }
 0xa9c   : > { %v9920_v6 = vsel %vm262_vm0, %v9916_v3, 0.0 }
 0xa9d   : > { %9921 = vadd.xlane.f32.xlu0 %v9920_v6  ;;  %v9917_v20 = vsel %vm262_vm0, %v9915_v4, 0.0 }
 0xa9e   : > { %9918 = vadd.xlane.f32.xlu1 %v9917_v20 }
 0xb2a   : > { %v9922_v5 = vpop.xlane.xlu0 %9921 }
 0xb2b   : > { %v9924_v7 = vmul.f32 0.03125, %v9922_v5  ;;  %v9919_v62 = vpop.xlane.xlu1 %9918 }
 0xb2c   : > { %v9923_v12 = vmul.f32 0.03125, %v9919_v62 }
 0xb2d   : > { %v9926_v13 = vadd.f32 1e-05, %v9924_v7 }
 0xb2e   : > { %v9925_v14 = vadd.f32 1e-05, %v9923_v12 }
 0xb2f   : > { %11719 = vrsqrt.f32 %v9926_v13 }
 0xb30   : > { %11721 = vrsqrt.f32 %v9925_v14 }
 0xb39   : > { %v11720_v22 = vpop.eup %11719 }
 0xb3a   : > { %v11722_v19 = vpop.eup %11721  ;;  %v9930_v24 = vmul.f32 %v11720_v22, %v9914_v2 }
 0xb3b   : > { %v9929_v25 = vmul.f32 %v11722_v19, %v9913_v42  ;;  %9948 = sbr.rel (%p10048_p5) target bundleno = 2883 (0xb43), region = 74 }
 0xb3c   : > { %v9936_v26 = vmul.f32 %v9934_v21, %v9930_v24 }
 0xb3d   : > { %v9935_v29 = vmul.f32 %v9934_v21, %v9929_v25 }
 0xb3e   : > { %v9942_v18 = vadd.f32 %v9940_v23, %v9936_v26 }
 0xb3f   : > { %v9941_v10 = vadd.f32 %v9940_v23, %v9935_v29 }
 0xb40   : > { %9944 = vst.msk [vmem:[#allocation2 + $0x8] sm:$0xff] %vm262_vm0, %v9942_v18 }
 0xb41   : > { %9943 = vst.msk [vmem:[#allocation2] sm:$0xff] %vm262_vm0, %v9941_v10 }
 0xb42   : > { %9950 = vst.msk [vmem:[#allocation5 - $0x7] sm:$0x80] %vm9949_vm7, %v9941_v10  ;;  %9951 = vst.msk [vmem:[#allocation5 - $0x6] sm:$0x80] %vm9949_vm7, %v9942_v18 }
 0xb43 PF: > { %p11660_p6 = scmp.eq.s32.totalorder %s11814_s16, 1  ;;  %s11781_s18 = smov [#allocation5]  }
 0xb44   : > { %s9958_s19 = sshll.u32 %s11781_s18, 4  ;;  %s9959_s19 = int_to_ptr.vmem [resolvable:$true] %s9958_s19 }
 0xb45   : > { %s11730_s20 = scalar_lea.vmem %s9959_s19, 32  ;;  %p11737_p10 = scmp.lt.s32.totalorder %s9959_s19, %s9959_s19 }
 0xb46   : > { %p11731_p7 = scmp.ne.s32.totalorder %s9959_s19, %s11730_s20  ;;  %p11738_p11 = scmp.lt.s32.totalorder %s11730_s20, %s11730_s20 }
 0xb48   : > { %p11732_p8 = pnand %p11731_p7, %p11660_p6  ;;  %p11739_p12 = por %p11738_p11, %p11737_p10 }
 0xb4a   : > { %p11733_p9 = pneg %p11732_p8 }
 0xb4c   : > { %p11740_p13 = pnand %p11739_p12, %p11733_p9 }
 0xb4e   : > { %11743 = shalt.err (!%p11740_p13)
}
 0xb4f   : > { %s11744_s23 = scalar_lea.hbm %s12604_s4, 32 }
 0xb50   : > { %p11745_p0 = scmp.ne.s32.totalorder %s12604_s4, %s11744_s23  ;;  %p11750_p3 = scmp.lt.u32.totalorder %s11744_s23, %s12604_s4 }
 0xb52   : > { %p11746_p1 = pnand %p11745_p0, %p11660_p6 }
 0xb54   : > { %p11747_p2 = pneg %p11746_p1 }
 0xb56   : > { %p11752_p4 = pnand %p11750_p3, %p11747_p2 }
 0xb58   : > { %11755 = shalt.err (!%p11752_p4)
}
 0xb59   : > { %s11782_s28 = smov 1  }
 0xb5a   : > { %11657 = dma.vmem_to_hbm [thread:$0]  (%p11660_p6), %s9959_s19, 32, %s12604_s4, [#allocation6], %s11778_s13, %s11778_s13, %s11782_s28  }
 0xb5b   : > { %11763 = dma.done.wait (%p11660_p6), [#allocation6], 32  }
 0xb5c   : > { %11765 = vsyncadd (%p11660_p6), [#allocation6], 4294967264 }
 0xb5d PF: > { %s15_s15 = sadd.s32 1, %s11768_s15  }
 0xb5e   : > { %p12_p5 = scmp.ge.s32.totalorder %s15_s15, 4  }
 0xb60   :  { %14 = sbr.rel (!%p12_p5) target bundleno = 1 (0x1), region = 115 }
 0xb67   :  { %9974 = vsyncpa [#allocation6], 1 }
 0xb68   :  { %9976 = vsyncpa [#allocation6 + $0x1], 1 }
 0xb69   :  { %9977 = vsyncmov [#allocation4] }
 0xb6c   :  { %s9978_s5 = vpop.sfrf %9977 }
 0xb6d   :  { %p10053_p7 = scmp.ne.s32.totalorder %s9978_s5, 0 }
 0xb6f   :  { %9982 = shalt.err (%p10053_p7)  }

</bundles_post_ra>
